<compile_context>
chip_gen: v6e
topology: v6e:2x2x1
jax: 0.10.0
libtpu: 0.0.40
codegen_flags: <defaults>
</compile_context>

<pallas_src>
from functools import partial

import jax
import jax.numpy as jnp
from jax.experimental import pallas as pl
from jax.experimental.pallas import tpu as pltpu

# ---------------- config (small synthetic shapes) ----------------
N = 8            # batch
C_IN = 3         # in_channels
T_LEN = 16       # frames
V = 8            # joints
M = 2            # persons
D_IN = C_IN * T_LEN * V * M      # 768 flattened input features
HIDDEN = 256                     # hidden_dim (dim_mlp)
FEAT = 128                       # feature_dim
K_QUEUE = 256                    # queue_size (small synthetic)
TEMP = 0.07                      # Temperature
MOMENTUM = 0.999                 # key-encoder momentum
EPS = 1e-12                      # F.normalize eps
NUM_BRANCH = 4                   # q, q_extreme, q_extreme_drop, q_extreme_drop_b

VMEM = pl.BlockSpec(memory_space=pltpu.MemorySpace.VMEM)


def _l2_normalize(x):
    # F.normalize(x, dim=1): x / max(||x||, eps) == x * rsqrt(max(||x||^2, eps^2))
    ss = jnp.sum(x * x, axis=1, keepdims=True)
    return x * jax.lax.rsqrt(jnp.maximum(ss, EPS * EPS))


# ---------------- the single fused kernel (encoders + MoCo head) ----------------
def _fused_kernel(x_qe_ref, x_k_ref,
                  w0q_ref, b0q_ref, w1q_ref, b1q_ref, w2q_ref, b2q_ref,
                  w0k_ref, b0k_ref, w1k_ref, b1k_ref, w2k_ref, b2k_ref,
                  mask_a_ref, mask_b_ref, queue_ref,
                  kn_ref, lneg_ref, pneg_ref, aux_ref,
                  h_all_scr, *, n, scale):
    # --- query encoder backbone: ONE matmul for the stacked [im_q ; im_q_extreme] rows
    h0 = jnp.dot(x_qe_ref[...], w0q_ref[...],
                 preferred_element_type=jnp.float32) + b0q_ref[...]       # (2n, H) f32
    h0_q = h0[:n]
    h0_e = h0[n:]

    # build the 4 query branches with 8-row-aligned VMEM-scratch stores (no concat)
    h_all_scr[0 * n:1 * n, :] = h0_q
    h_all_scr[1 * n:2 * n, :] = h0_e
    h_all_scr[2 * n:3 * n, :] = h0_e * mask_a_ref[...]
    h_all_scr[3 * n:4 * n, :] = h0_e * mask_b_ref[...]

    # MLP projection head (Linear -> ReLU -> Linear), all 4 branches in one 4n-row pass
    h1 = jnp.maximum(
        jnp.dot(h_all_scr[...].astype(jnp.bfloat16), w1q_ref[...],
                preferred_element_type=jnp.float32) + b1q_ref[...], 0.0)
    q_out = jnp.dot(h1.astype(jnp.bfloat16), w2q_ref[...],
                    preferred_element_type=jnp.float32) + b2q_ref[...]    # (4n, F)
    qn = _l2_normalize(q_out)

    # --- key encoder (momentum copy, no drop)
    h0k = jnp.dot(x_k_ref[...], w0k_ref[...],
                  preferred_element_type=jnp.float32) + b0k_ref[...]
    h1k = jnp.maximum(
        jnp.dot(h0k.astype(jnp.bfloat16), w1k_ref[...],
                preferred_element_type=jnp.float32) + b1k_ref[...], 0.0)
    k_out = jnp.dot(h1k.astype(jnp.bfloat16), w2k_ref[...],
                    preferred_element_type=jnp.float32) + b2k_ref[...]    # (n, F)
    kn = _l2_normalize(k_out)
    kn_ref[...] = kn

    # --- MoCo head, fused: one 4n-row queue matmul (1/T folded into `scale`)
    kn4 = jnp.concatenate([kn, kn, kn, kn], axis=0)                       # (4n, F)
    lp = jnp.sum(qn * kn4, axis=1, keepdims=True) * scale                 # (4n, 1)
    ln = jnp.dot(qn.astype(jnp.bfloat16), queue_ref[...],
                 preferred_element_type=jnp.float32) * scale              # (4n, K)
    lneg_ref[...] = ln

    # softmax over [l_pos | l_neg] with a STATIC max bound: all operands are
    # L2-normalized, so every logit <= 1/T == scale.  Exact reciprocal.
    ep = jnp.exp(lp - scale)
    en = jnp.exp(ln - scale)
    inv = 1.0 / (ep + jnp.sum(en, axis=1, keepdims=True))
    pneg_ref[...] = en * inv
    pp = ep * inv

    # pack the two per-row scalars into one lane-dense (4n, 128) output:
    # column 0 = l_pos (scaled logit), column 1 = softmax prob of the positive
    rows = NUM_BRANCH * n
    col = jax.lax.broadcasted_iota(jnp.int32, (rows, FEAT), 1)
    aux_ref[...] = jnp.where(col == 0, lp, jnp.where(col == 1, pp, 0.0))


def aimclr_fused(params_q_bf, params_k_bf, x_qe, x_k, mask_a, mask_b, queue_bf16, n):
    w0q, b0q, w1q, b1q, w2q, b2q = params_q_bf
    w0k, b0k, w1k, b1k, w2k, b2k = params_k_bf
    rows = NUM_BRANCH * n
    return pl.pallas_call(
        partial(_fused_kernel, n=n, scale=1.0 / TEMP),
        out_shape=(
            jax.ShapeDtypeStruct((n, FEAT), jnp.float32),         # normalized k
            jax.ShapeDtypeStruct((rows, K_QUEUE), jnp.float32),   # scaled l_neg (all branches)
            jax.ShapeDtypeStruct((rows, K_QUEUE), jnp.float32),   # softmax probs of negatives
            jax.ShapeDtypeStruct((rows, FEAT), jnp.float32),      # aux: col0=l_pos, col1=p_pos
        ),
        in_specs=[VMEM] * 17,
        out_specs=(VMEM, VMEM, VMEM, VMEM),
        scratch_shapes=[pltpu.VMEM((rows, HIDDEN), jnp.float32)],
    )(x_qe, x_k, w0q, b0q, w1q, b1q, w2q, b2q,
      w0k, b0k, w1k, b1k, w2k, b2k, mask_a, mask_b, queue_bf16)


# ---------------- forward (pretrain=True, nnm=False path) ----------------
@jax.jit
def aimclr_forward(params_q, params_k, queue_bf16, queue_ptr,
                   im_q_extreme, im_q, im_k):
    n = im_q.shape[0]
    flat = lambda x: x.reshape(n, -1)

    # momentum update of key encoder (no_grad glue)
    params_k = tuple(
        jax.lax.stop_gradient(pk * MOMENTUM + pq * (1.0 - MOMENTUM))
        for pk, pq in zip(params_k, params_q)
    )

    # cast weights (not biases) once to bf16 for the MXU; accumulation stays f32
    def to_mxu(p):
        w0, b0, w1, b1, w2, b2 = p
        return (w0.astype(jnp.bfloat16), b0,
                w1.astype(jnp.bfloat16), b1,
                w2.astype(jnp.bfloat16), b2)

    pq_bf = to_mxu(params_q)
    pk_bf = to_mxu(params_k)

    # TODO(synk): AimCLR's drop=True uses attention/edge dropping inside ST-GCN;
    # modeled here as two deterministic complementary hidden-channel masks.
    mask_a = (jnp.arange(HIDDEN) % 2 == 0).astype(jnp.float32)[None, :]
    mask_b = (jnp.arange(HIDDEN) % 2 == 1).astype(jnp.float32)[None, :]

    # stack [im_q ; im_q_extreme] so the backbone matmul runs once on 2N rows
    x_qe = jnp.concatenate([flat(im_q), flat(im_q_extreme)], axis=0).astype(jnp.bfloat16)
    x_k = flat(im_k).astype(jnp.bfloat16)

    # ONE kernel launch for everything
    kn, lneg, pneg, aux = aimclr_fused(pq_bf, pk_bf, x_qe, x_k,
                                       mask_a, mask_b, queue_bf16, n)

    lpos = aux[:, 0:1]     # scaled positive logits, all 4 branches
    ppos = aux[:, 1:2]     # softmax prob of the positive column, all 4 branches

    # assemble 257-wide outputs in the JAX wrapper (lane-dense stores in-kernel)
    logits      = jnp.concatenate([lpos[:n],             lneg[:n]],             axis=1)
    labels_ddm  = jnp.concatenate([ppos[:n],             pneg[:n]],             axis=1)
    logits_e    = jnp.concatenate([ppos[n:2 * n],        pneg[n:2 * n]],        axis=1)
    logits_ed   = jnp.concatenate([ppos[2 * n:3 * n],    pneg[2 * n:3 * n]],    axis=1)
    logits_ed_b = jnp.concatenate([ppos[3 * n:],         pneg[3 * n:]],         axis=1)

    labels = jnp.zeros((n,), dtype=jnp.int32)

    # _dequeue_and_enqueue + update_ptr (buffer update glue, gpu_index = 0).
    # Queue is persistently bf16; no wrap, like the original (valid while K % n == 0).
    new_queue = jax.lax.dynamic_update_slice(
        queue_bf16, kn.T.astype(jnp.bfloat16), (0, queue_ptr))
    new_ptr = (queue_ptr + n) % K_QUEUE

    return (logits, labels, logits_e, logits_ed, logits_ed_b, labels_ddm), \
           new_queue, new_ptr, params_k


# ---------------- deterministic parameter construction ----------------
def init_params(key):
    ks = jax.random.split(key, 6)
    w0 = jax.random.normal(ks[0], (D_IN, HIDDEN), jnp.float32) * (1.0 / D_IN ** 0.5)
    b0 = jax.random.normal(ks[1], (1, HIDDEN), jnp.float32) * 0.01
    w1 = jax.random.normal(ks[2], (HIDDEN, HIDDEN), jnp.float32) * (1.0 / HIDDEN ** 0.5)
    b1 = jax.random.normal(ks[3], (1, HIDDEN), jnp.float32) * 0.01
    w2 = jax.random.normal(ks[4], (HIDDEN, FEAT), jnp.float32) * (1.0 / HIDDEN ** 0.5)
    b2 = jax.random.normal(ks[5], (1, FEAT), jnp.float32) * 0.01
    return (w0, b0, w1, b1, w2, b2)


# ---------------- pure-JAX reference (same dtype policy as the kernel) ----------------
def reference_forward(params_q, params_k_new, queue_bf16, im_q_extreme, im_q, im_k):
    bf = jnp.bfloat16
    n = im_q.shape[0]
    flat = lambda x: x.reshape(n, -1)
    mask_a = (jnp.arange(HIDDEN) % 2 == 0).astype(jnp.float32)[None, :]
    mask_b = (jnp.arange(HIDDEN) % 2 == 1).astype(jnp.float32)[None, :]

    def backbone(p, x):
        w0, b0, *_ = p
        return jnp.dot(x.astype(bf), w0.astype(bf),
                       preferred_element_type=jnp.float32) + b0

    def head(p, h0):
        _, _, w1, b1, w2, b2 = p
        h1 = jnp.maximum(jnp.dot(h0.astype(bf), w1.astype(bf),
                                 preferred_element_type=jnp.float32) + b1, 0.0)
        return jnp.dot(h1.astype(bf), w2.astype(bf),
                       preferred_element_type=jnp.float32) + b2

    def l2n(x):
        return x / jnp.maximum(jnp.linalg.norm(x, axis=1, keepdims=True), EPS)

    h0q = backbone(params_q, flat(im_q))
    h0e = backbone(params_q, flat(im_q_extreme))
    q = l2n(head(params_q, h0q))
    qe = l2n(head(params_q, h0e))
    qed = l2n(head(params_q, h0e * mask_a))
    qedb = l2n(head(params_q, h0e * mask_b))
    k = l2n(head(params_k_new, backbone(params_k_new, flat(im_k))))

    def branch(qx):
        lp = jnp.sum(qx * k, axis=1, keepdims=True)
        ln = jnp.dot(qx.astype(bf), queue_bf16,
                     preferred_element_type=jnp.float32)
        return jnp.concatenate([lp, ln], axis=1) / TEMP

    logits = branch(q)
    return (logits,
            jax.nn.softmax(branch(qe), axis=1),
            jax.nn.softmax(branch(qed), axis=1),
            jax.nn.softmax(branch(qedb), axis=1),
            jax.nn.softmax(logits, axis=1),
            k)


if __name__ == "__main__":
    root = jax.random.PRNGKey(0)
    k_params, k_queue, k_q, k_k, k_e = jax.random.split(root, 5)

    params_q = init_params(k_params)
    # encoder_k initialized as a copy of encoder_q (param_k.data.copy_(param_q.data))
    params_k = tuple(p for p in params_q)

    # queue buffer: randn(feature_dim, K) normalized along dim=0, stored in bf16
    queue = jax.random.normal(k_queue, (FEAT, K_QUEUE), jnp.float32)
    queue = queue / jnp.maximum(jnp.linalg.norm(queue, axis=0, keepdims=True), EPS)
    queue_bf16 = queue.astype(jnp.bfloat16)
    queue_ptr = jnp.int32(0)

    shape = (N, C_IN, T_LEN, V, M)   # NCTVM skeleton sequences
    im_q = jax.random.normal(k_q, shape, jnp.float32)
    im_k = jax.random.normal(k_k, shape, jnp.float32)
    im_q_extreme = jax.random.normal(k_e, shape, jnp.float32)

    (logits, labels, logits_e, logits_ed, logits_ed_b, labels_ddm), \
        new_queue, new_ptr, new_params_k = aimclr_forward(
            params_q, params_k, queue_bf16, queue_ptr, im_q_extreme, im_q, im_k)

    jax.block_until_ready((logits, labels, logits_e, logits_ed,
                           logits_ed_b, labels_ddm, new_queue, new_ptr))

    # shape / structural checks
    assert logits.shape == (N, 1 + K_QUEUE)
    assert labels.shape == (N,) and bool(jnp.all(labels == 0))
    assert logits_e.shape == (N, 1 + K_QUEUE)
    assert logits_ed.shape == (N, 1 + K_QUEUE)
    assert logits_ed_b.shape == (N, 1 + K_QUEUE)
    assert labels_ddm.shape == (N, 1 + K_QUEUE)
    assert new_queue.shape == (FEAT, K_QUEUE) and new_queue.dtype == jnp.bfloat16
    assert int(new_ptr) == N % K_QUEUE

    # softmax rows sum to 1 (exact reciprocal in-kernel -> tight tolerance)
    for probs in (labels_ddm, logits_e, logits_ed, logits_ed_b):
        assert jnp.allclose(jnp.sum(probs, axis=1), 1.0, atol=1e-3)

    # numerical check against a pure-JAX reference with the same dtype policy
    r_logits, r_e, r_ed, r_edb, r_ddm, r_k = reference_forward(
        params_q, new_params_k, queue_bf16, im_q_extreme, im_q, im_k)
    assert jnp.allclose(logits, r_logits, atol=5e-2)
    assert jnp.allclose(labels_ddm, r_ddm, atol=2e-2)
    assert jnp.allclose(logits_e, r_e, atol=2e-2)
    assert jnp.allclose(logits_ed, r_ed, atol=2e-2)
    assert jnp.allclose(logits_ed_b, r_edb, atol=2e-2)
    # enqueue wrote the (bf16) normalized keys into the first N queue columns
    assert jnp.allclose(new_queue[:, :N].astype(jnp.float32), r_k.T, atol=1e-2)

    print("KERNEL_OK")
</pallas_src>

<mosaic_0001>
module attributes {stable_mosaic.version = 11 : i64} {
  func.func @_fused_kernel(%arg0: memref<16x768xbf16, #tpu.memory_space<vmem>>, %arg1: memref<8x768xbf16, #tpu.memory_space<vmem>>, %arg2: memref<768x256xbf16, #tpu.memory_space<vmem>>, %arg3: memref<1x256xf32, #tpu.memory_space<vmem>>, %arg4: memref<256x256xbf16, #tpu.memory_space<vmem>>, %arg5: memref<1x256xf32, #tpu.memory_space<vmem>>, %arg6: memref<256x128xbf16, #tpu.memory_space<vmem>>, %arg7: memref<1x128xf32, #tpu.memory_space<vmem>>, %arg8: memref<768x256xbf16, #tpu.memory_space<vmem>>, %arg9: memref<1x256xf32, #tpu.memory_space<vmem>>, %arg10: memref<256x256xbf16, #tpu.memory_space<vmem>>, %arg11: memref<1x256xf32, #tpu.memory_space<vmem>>, %arg12: memref<256x128xbf16, #tpu.memory_space<vmem>>, %arg13: memref<1x128xf32, #tpu.memory_space<vmem>>, %arg14: memref<1x256xf32, #tpu.memory_space<vmem>>, %arg15: memref<1x256xf32, #tpu.memory_space<vmem>>, %arg16: memref<128x256xbf16, #tpu.memory_space<vmem>>, %arg17: memref<8x128xf32, #tpu.memory_space<vmem>>, %arg18: memref<32x256xf32, #tpu.memory_space<vmem>>, %arg19: memref<32x256xf32, #tpu.memory_space<vmem>>, %arg20: memref<32x128xf32, #tpu.memory_space<vmem>>, %arg21: memref<32x256xf32, #tpu.memory_space<vmem>>) attributes {dimension_semantics = [], scalar_prefetch = 0 : i64, scratch_operands = 1 : i64, tpu.core_type = #tpu.core_type<tc>} {
    %c0 = arith.constant 0 : index
    %c0_0 = arith.constant 0 : index
    %0 = vector.load %arg0[%c0, %c0_0] : memref<16x768xbf16, #tpu.memory_space<vmem>>, vector<16x768xbf16>
    %c0_1 = arith.constant 0 : index
    %c0_2 = arith.constant 0 : index
    %1 = vector.load %arg2[%c0_1, %c0_2] : memref<768x256xbf16, #tpu.memory_space<vmem>>, vector<768x256xbf16>
    %cst = arith.constant dense<0.000000e+00> : vector<16x256xf32>
    %2 = tpu.matmul %0, %1, %cst {dimension_numbers = #tpu.dot_dimension_numbers<[1], [0], [0], [1], [0, 0, 1, 1], [], []>} : vector<16x768xbf16>, vector<768x256xbf16>, vector<16x256xf32> -> vector<16x256xf32>
    %c0_3 = arith.constant 0 : index
    %c0_4 = arith.constant 0 : index
    %3 = vector.load %arg3[%c0_3, %c0_4] : memref<1x256xf32, #tpu.memory_space<vmem>>, vector<1x256xf32>
    %4 = vector.broadcast %3 : vector<1x256xf32> to vector<16x256xf32>
    %5 = arith.addf %2, %4 : vector<16x256xf32>
    %6 = vector.extract_strided_slice %5 {offsets = [0, 0], sizes = [8, 256], strides = [1, 1]} : vector<16x256xf32> to vector<8x256xf32>
    %7 = vector.extract_strided_slice %5 {offsets = [8, 0], sizes = [8, 256], strides = [1, 1]} : vector<16x256xf32> to vector<8x256xf32>
    %c0_5 = arith.constant 0 : index
    %c0_6 = arith.constant 0 : index
    %8 = vector.load %arg21[%c0_5, %c0_6] : memref<32x256xf32, #tpu.memory_space<vmem>>, vector<8x256xf32>
    tpu.vector_store %arg21[%c0_5, %c0_6], %6 {strides = array<i32>} : memref<32x256xf32, #tpu.memory_space<vmem>>, vector<8x256xf32>,
    %c8 = arith.constant 8 : index
    %c0_7 = arith.constant 0 : index
    %9 = vector.load %arg21[%c8, %c0_7] : memref<32x256xf32, #tpu.memory_space<vmem>>, vector<8x256xf32>
    tpu.vector_store %arg21[%c8, %c0_7], %7 {strides = array<i32>} : memref<32x256xf32, #tpu.memory_space<vmem>>, vector<8x256xf32>,
    %c0_8 = arith.constant 0 : index
    %c0_9 = arith.constant 0 : index
    %10 = vector.load %arg14[%c0_8, %c0_9] : memref<1x256xf32, #tpu.memory_space<vmem>>, vector<1x256xf32>
    %11 = vector.broadcast %10 : vector<1x256xf32> to vector<8x256xf32>
    %12 = arith.mulf %7, %11 : vector<8x256xf32>
    %c16 = arith.constant 16 : index
    %c0_10 = arith.constant 0 : index
    %13 = vector.load %arg21[%c16, %c0_10] : memref<32x256xf32, #tpu.memory_space<vmem>>, vector<8x256xf32>
    tpu.vector_store %arg21[%c16, %c0_10], %12 {strides = array<i32>} : memref<32x256xf32, #tpu.memory_space<vmem>>, vector<8x256xf32>,
    %c0_11 = arith.constant 0 : index
    %c0_12 = arith.constant 0 : index
    %14 = vector.load %arg15[%c0_11, %c0_12] : memref<1x256xf32, #tpu.memory_space<vmem>>, vector<1x256xf32>
    %15 = vector.broadcast %14 : vector<1x256xf32> to vector<8x256xf32>
    %16 = arith.mulf %7, %15 : vector<8x256xf32>
    %c24 = arith.constant 24 : index
    %c0_13 = arith.constant 0 : index
    %17 = vector.load %arg21[%c24, %c0_13] : memref<32x256xf32, #tpu.memory_space<vmem>>, vector<8x256xf32>
    tpu.vector_store %arg21[%c24, %c0_13], %16 {strides = array<i32>} : memref<32x256xf32, #tpu.memory_space<vmem>>, vector<8x256xf32>,
    %c0_14 = arith.constant 0 : index
    %c0_15 = arith.constant 0 : index
    %18 = vector.load %arg21[%c0_14, %c0_15] : memref<32x256xf32, #tpu.memory_space<vmem>>, vector<32x256xf32>
    %19 = arith.truncf %18 : vector<32x256xf32> to vector<32x256xbf16>
    %c0_16 = arith.constant 0 : index
    %c0_17 = arith.constant 0 : index
    %20 = vector.load %arg4[%c0_16, %c0_17] : memref<256x256xbf16, #tpu.memory_space<vmem>>, vector<256x256xbf16>
    %cst_18 = arith.constant dense<0.000000e+00> : vector<32x256xf32>
    %21 = tpu.matmul %19, %20, %cst_18 {dimension_numbers = #tpu.dot_dimension_numbers<[1], [0], [0], [1], [0, 0, 1, 1], [], []>} : vector<32x256xbf16>, vector<256x256xbf16>, vector<32x256xf32> -> vector<32x256xf32>
    %c0_19 = arith.constant 0 : index
    %c0_20 = arith.constant 0 : index
    %22 = vector.load %arg5[%c0_19, %c0_20] : memref<1x256xf32, #tpu.memory_space<vmem>>, vector<1x256xf32>
    %23 = vector.broadcast %22 : vector<1x256xf32> to vector<32x256xf32>
    %24 = arith.addf %21, %23 : vector<32x256xf32>
    %cst_21 = arith.constant 0.000000e+00 : f32
    %25 = vector.broadcast %cst_21 : f32 to vector<32x256xf32>
    %26 = arith.maximumf %24, %25 : vector<32x256xf32>
    %27 = arith.truncf %26 : vector<32x256xf32> to vector<32x256xbf16>
    %c0_22 = arith.constant 0 : index
    %c0_23 = arith.constant 0 : index
    %28 = vector.load %arg6[%c0_22, %c0_23] : memref<256x128xbf16, #tpu.memory_space<vmem>>, vector<256x128xbf16>
    %cst_24 = arith.constant dense<0.000000e+00> : vector<32x128xf32>
    %29 = tpu.matmul %27, %28, %cst_24 {dimension_numbers = #tpu.dot_dimension_numbers<[1], [0], [0], [1], [0, 0, 1, 1], [], []>} : vector<32x256xbf16>, vector<256x128xbf16>, vector<32x128xf32> -> vector<32x128xf32>
    %c0_25 = arith.constant 0 : index
    %c0_26 = arith.constant 0 : index
    %30 = vector.load %arg7[%c0_25, %c0_26] : memref<1x128xf32, #tpu.memory_space<vmem>>, vector<1x128xf32>
    %31 = vector.broadcast %30 : vector<1x128xf32> to vector<32x128xf32>
    %32 = arith.addf %29, %31 : vector<32x128xf32>
    %33 = arith.mulf %32, %32 : vector<32x128xf32>
    %cst_27 = arith.constant dense<0.000000e+00> : vector<32xf32>
    %34 = vector.multi_reduction <add>, %33, %cst_27 [1] : vector<32x128xf32> to vector<32xf32>
    %35 = vector.shape_cast %34 : vector<32xf32> to vector<32x1xf32>
    %cst_28 = arith.constant 1.000000e-24 : f32
    %36 = vector.broadcast %cst_28 : f32 to vector<32x1xf32>
    %37 = arith.maximumf %35, %36 : vector<32x1xf32>
    %38 = math.rsqrt %37 : vector<32x1xf32>
    %39 = vector.broadcast %38 : vector<32x1xf32> to vector<32x128xf32>
    %40 = arith.mulf %32, %39 : vector<32x128xf32>
    %c0_29 = arith.constant 0 : index
    %c0_30 = arith.constant 0 : index
    %41 = vector.load %arg1[%c0_29, %c0_30] : memref<8x768xbf16, #tpu.memory_space<vmem>>, vector<8x768xbf16>
    %c0_31 = arith.constant 0 : index
    %c0_32 = arith.constant 0 : index
    %42 = vector.load %arg8[%c0_31, %c0_32] : memref<768x256xbf16, #tpu.memory_space<vmem>>, vector<768x256xbf16>
    %cst_33 = arith.constant dense<0.000000e+00> : vector<8x256xf32>
    %43 = tpu.matmul %41, %42, %cst_33 {dimension_numbers = #tpu.dot_dimension_numbers<[1], [0], [0], [1], [0, 0, 1, 1], [], []>} : vector<8x768xbf16>, vector<768x256xbf16>, vector<8x256xf32> -> vector<8x256xf32>
    %c0_34 = arith.constant 0 : index
    %c0_35 = arith.constant 0 : index
    %44 = vector.load %arg9[%c0_34, %c0_35] : memref<1x256xf32, #tpu.memory_space<vmem>>, vector<1x256xf32>
    %45 = vector.broadcast %44 : vector<1x256xf32> to vector<8x256xf32>
    %46 = arith.addf %43, %45 : vector<8x256xf32>
    %47 = arith.truncf %46 : vector<8x256xf32> to vector<8x256xbf16>
    %c0_36 = arith.constant 0 : index
    %c0_37 = arith.constant 0 : index
    %48 = vector.load %arg10[%c0_36, %c0_37] : memref<256x256xbf16, #tpu.memory_space<vmem>>, vector<256x256xbf16>
    %cst_38 = arith.constant dense<0.000000e+00> : vector<8x256xf32>
    %49 = tpu.matmul %47, %48, %cst_38 {dimension_numbers = #tpu.dot_dimension_numbers<[1], [0], [0], [1], [0, 0, 1, 1], [], []>} : vector<8x256xbf16>, vector<256x256xbf16>, vector<8x256xf32> -> vector<8x256xf32>
    %c0_39 = arith.constant 0 : index
    %c0_40 = arith.constant 0 : index
    %50 = vector.load %arg11[%c0_39, %c0_40] : memref<1x256xf32, #tpu.memory_space<vmem>>, vector<1x256xf32>
    %51 = vector.broadcast %50 : vector<1x256xf32> to vector<8x256xf32>
    %52 = arith.addf %49, %51 : vector<8x256xf32>
    %cst_41 = arith.constant 0.000000e+00 : f32
    %53 = vector.broadcast %cst_41 : f32 to vector<8x256xf32>
    %54 = arith.maximumf %52, %53 : vector<8x256xf32>
    %55 = arith.truncf %54 : vector<8x256xf32> to vector<8x256xbf16>
    %c0_42 = arith.constant 0 : index
    %c0_43 = arith.constant 0 : index
    %56 = vector.load %arg12[%c0_42, %c0_43] : memref<256x128xbf16, #tpu.memory_space<vmem>>, vector<256x128xbf16>
    %cst_44 = arith.constant dense<0.000000e+00> : vector<8x128xf32>
    %57 = tpu.matmul %55, %56, %cst_44 {dimension_numbers = #tpu.dot_dimension_numbers<[1], [0], [0], [1], [0, 0, 1, 1], [], []>} : vector<8x256xbf16>, vector<256x128xbf16>, vector<8x128xf32> -> vector<8x128xf32>
    %c0_45 = arith.constant 0 : index
    %c0_46 = arith.constant 0 : index
    %58 = vector.load %arg13[%c0_45, %c0_46] : memref<1x128xf32, #tpu.memory_space<vmem>>, vector<1x128xf32>
    %59 = vector.broadcast %58 : vector<1x128xf32> to vector<8x128xf32>
    %60 = arith.addf %57, %59 : vector<8x128xf32>
    %61 = arith.mulf %60, %60 : vector<8x128xf32>
    %cst_47 = arith.constant dense<0.000000e+00> : vector<8xf32>
    %62 = vector.multi_reduction <add>, %61, %cst_47 [1] : vector<8x128xf32> to vector<8xf32>
    %63 = vector.shape_cast %62 : vector<8xf32> to vector<8x1xf32>
    %cst_48 = arith.constant 1.000000e-24 : f32
    %64 = vector.broadcast %cst_48 : f32 to vector<8x1xf32>
    %65 = arith.maximumf %63, %64 : vector<8x1xf32>
    %66 = math.rsqrt %65 : vector<8x1xf32>
    %67 = vector.broadcast %66 : vector<8x1xf32> to vector<8x128xf32>
    %68 = arith.mulf %60, %67 : vector<8x128xf32>
    %c0_49 = arith.constant 0 : index
    %c0_50 = arith.constant 0 : index
    %69 = vector.load %arg17[%c0_49, %c0_50] : memref<8x128xf32, #tpu.memory_space<vmem>>, vector<8x128xf32>
    tpu.vector_store %arg17[%c0_49, %c0_50], %68 {strides = array<i32>} : memref<8x128xf32, #tpu.memory_space<vmem>>, vector<8x128xf32>,
    %70 = tpu.concatenate %68, %68, %68, %68 in 0 : vector<8x128xf32>, vector<8x128xf32>, vector<8x128xf32>, vector<8x128xf32> -> vector<32x128xf32>
    %71 = arith.mulf %40, %70 : vector<32x128xf32>
    %cst_51 = arith.constant dense<0.000000e+00> : vector<32xf32>
    %72 = vector.multi_reduction <add>, %71, %cst_51 [1] : vector<32x128xf32> to vector<32xf32>
    %73 = vector.shape_cast %72 : vector<32xf32> to vector<32x1xf32>
    %cst_52 = arith.constant 14.2857141 : f32
    %74 = vector.broadcast %cst_52 : f32 to vector<32x1xf32>
    %75 = arith.mulf %73, %74 : vector<32x1xf32>
    %76 = arith.truncf %40 : vector<32x128xf32> to vector<32x128xbf16>
    %c0_53 = arith.constant 0 : index
    %c0_54 = arith.constant 0 : index
    %77 = vector.load %arg16[%c0_53, %c0_54] : memref<128x256xbf16, #tpu.memory_space<vmem>>, vector<128x256xbf16>
    %cst_55 = arith.constant dense<0.000000e+00> : vector<32x256xf32>
    %78 = tpu.matmul %76, %77, %cst_55 {dimension_numbers = #tpu.dot_dimension_numbers<[1], [0], [0], [1], [0, 0, 1, 1], [], []>} : vector<32x128xbf16>, vector<128x256xbf16>, vector<32x256xf32> -> vector<32x256xf32>
    %cst_56 = arith.constant 14.2857141 : f32
    %79 = vector.broadcast %cst_56 : f32 to vector<32x256xf32>
    %80 = arith.mulf %78, %79 : vector<32x256xf32>
    %c0_57 = arith.constant 0 : index
    %c0_58 = arith.constant 0 : index
    %81 = vector.load %arg18[%c0_57, %c0_58] : memref<32x256xf32, #tpu.memory_space<vmem>>, vector<32x256xf32>
    tpu.vector_store %arg18[%c0_57, %c0_58], %80 {strides = array<i32>} : memref<32x256xf32, #tpu.memory_space<vmem>>, vector<32x256xf32>,
    %cst_59 = arith.constant 14.2857141 : f32
    %82 = vector.broadcast %cst_59 : f32 to vector<32x1xf32>
    %83 = arith.subf %75, %82 : vector<32x1xf32>
    %84 = math.exp %83 : vector<32x1xf32>
    %cst_60 = arith.constant 14.2857141 : f32
    %85 = vector.broadcast %cst_60 : f32 to vector<32x256xf32>
    %86 = arith.subf %80, %85 : vector<32x256xf32>
    %87 = math.exp %86 : vector<32x256xf32>
    %cst_61 = arith.constant dense<0.000000e+00> : vector<32xf32>
    %88 = vector.multi_reduction <add>, %87, %cst_61 [1] : vector<32x256xf32> to vector<32xf32>
    %89 = vector.shape_cast %88 : vector<32xf32> to vector<32x1xf32>
    %90 = arith.addf %84, %89 : vector<32x1xf32>
    %cst_62 = arith.constant 1.000000e+00 : f32
    %91 = vector.broadcast %cst_62 : f32 to vector<32x1xf32>
    %92 = arith.divf %91, %90 : vector<32x1xf32>
    %93 = vector.broadcast %92 : vector<32x1xf32> to vector<32x256xf32>
    %94 = arith.mulf %87, %93 : vector<32x256xf32>
    %c0_63 = arith.constant 0 : index
    %c0_64 = arith.constant 0 : index
    %95 = vector.load %arg19[%c0_63, %c0_64] : memref<32x256xf32, #tpu.memory_space<vmem>>, vector<32x256xf32>
    tpu.vector_store %arg19[%c0_63, %c0_64], %94 {strides = array<i32>} : memref<32x256xf32, #tpu.memory_space<vmem>>, vector<32x256xf32>,
    %96 = arith.mulf %84, %92 : vector<32x1xf32>
    %97 = tpu.iota {dimensions = array<i32: 1>} : vector<32x128xi32>
    %c0_i32 = arith.constant 0 : i32
    %98 = vector.broadcast %c0_i32 : i32 to vector<32x128xi32>
    %99 = arith.cmpi eq, %97, %98 : vector<32x128xi32>
    %c1_i32 = arith.constant 1 : i32
    %100 = vector.broadcast %c1_i32 : i32 to vector<32x128xi32>
    %101 = arith.cmpi eq, %97, %100 : vector<32x128xi32>
    %cst_65 = arith.constant 0.000000e+00 : f32
    %102 = vector.shape_cast %96 : vector<32x1xf32> to vector<32x1xf32>
    %103 = vector.broadcast %102 : vector<32x1xf32> to vector<32x128xf32>
    %104 = vector.broadcast %cst_65 : f32 to vector<32x128xf32>
    %105 = arith.select %101, %103, %104 : vector<32x128xi1>, vector<32x128xf32>
    %106 = vector.shape_cast %75 : vector<32x1xf32> to vector<32x1xf32>
    %107 = vector.broadcast %106 : vector<32x1xf32> to vector<32x128xf32>
    %108 = arith.select %99, %107, %105 : vector<32x128xi1>, vector<32x128xf32>
    %c0_66 = arith.constant 0 : index
    %c0_67 = arith.constant 0 : index
    %109 = vector.load %arg20[%c0_66, %c0_67] : memref<32x128xf32, #tpu.memory_space<vmem>>, vector<32x128xf32>
    tpu.vector_store %arg20[%c0_66, %c0_67], %108 {strides = array<i32>} : memref<32x128xf32, #tpu.memory_space<vmem>>, vector<32x128xf32>,
    return
  }
}

</mosaic_0001>

<bundles_post_ra>
// kernel: aimclr_forward.1
= control target key start
LH: loop header
LB: loop body
LE: loop exit
PB: predicated region body
PF: predicated region fallthrough
CT: control target
= control target key end

     0   :  { %s4916_s2 = inlined_call_operand.vmem [shape: bf16[768,256], index: 2, kind: input, shape index: {}]   ;;  %s4917_s0 = inlined_call_operand.vmem [shape: bf16[16,768], index: 0, kind: input, shape index: {}]   ;;  %s4918_s4 = inlined_call_operand.vmem [shape: bf16[256,256], index: 4, kind: input, shape index: {}]   ;;  %s4919_s6 = inlined_call_operand.vmem [shape: bf16[256,128], index: 6, kind: input, shape index: {}]   ;;  %s4920_s3 = inlined_call_operand.vmem [shape: f32[1,256], index: 3, kind: input, shape index: {}]   ;;  %s4921_s14 = inlined_call_operand.vmem [shape: f32[1,256], index: 14, kind: input, shape index: {}]   ;;  %s4922_s15 = inlined_call_operand.vmem [shape: f32[1,256], index: 15, kind: input, shape index: {}]   ;;  %s4923_s8 = inlined_call_operand.vmem [shape: bf16[768,256], index: 8, kind: input, shape index: {}]   ;;  %s4924_s1 = inlined_call_operand.vmem [shape: bf16[8,768], index: 1, kind: input, shape index: {}]   ;;  %s4925_s5 = inlined_call_operand.vmem [shape: f32[1,256], index: 5, kind: input, shape index: {}]   ;;  %s4926_s10 = inlined_call_operand.vmem [shape: bf16[256,256], index: 10, kind: input, shape index: {}]   ;;  %s4927_s7 = inlined_call_operand.vmem [shape: f32[1,128], index: 7, kind: input, shape index: {}]   ;;  %s4928_s16 = inlined_call_operand.vmem [shape: bf16[128,256], index: 16, kind: input, shape index: {}]   ;;  %s4929_s12 = inlined_call_operand.vmem [shape: bf16[256,128], index: 12, kind: input, shape index: {}]   ;;  %s4930_s9 = inlined_call_operand.vmem [shape: f32[1,256], index: 9, kind: input, shape index: {}]   ;;  %s4931_s11 = inlined_call_operand.vmem [shape: f32[1,256], index: 11, kind: input, shape index: {}]   ;;  %s4932_s18 = inlined_call_operand.vmem [shape: f32[32,256], index: 18, kind: output, shape index: {1}]   ;;  %s4933_s13 = inlined_call_operand.vmem [shape: f32[1,128], index: 13, kind: input, shape index: {}]   ;;  %s4934_s17 = inlined_call_operand.vmem [shape: f32[8,128], index: 17, kind: output, shape index: {0}]   ;;  %s4935_s19 = inlined_call_operand.vmem [shape: f32[32,256], index: 19, kind: output, shape index: {2}]   ;;  %s4936_s20 = inlined_call_operand.vmem [shape: f32[32,128], index: 20, kind: output, shape index: {3}]  }
   0x1   :  { %4941 = sst [smem:[#allocation3_spill]] %s4916_s2 }
   0x2   :  { %4942 = sst [smem:[#allocation4_spill]] %s4917_s0 }
   0x3   :  { %4943 = sst [smem:[#allocation5_spill]] %s4918_s4 }
   0x4   :  { %4944 = sst [smem:[#allocation6_spill]] %s4919_s6 }
   0x5   :  { %4945 = sst [smem:[#allocation7_spill]] %s4920_s3 }
   0x6   :  { %s4946_s23 = sld [smem:[#allocation3_spill]] }
   0x7   :  { %s4947_s2 = sld [smem:[#allocation4_spill]] }
   0x8   :  { %s4948_s6 = sld [smem:[#allocation5_spill]] }
   0x9   :  { %s4949_s21 = sld [smem:[#allocation6_spill]] }
   0xa   :  { %s4950_s24 = sld [smem:[#allocation7_spill]] }
   0xc   :  { %v3183_v0 = vld [vmem:[%s4946_s23 + $0x74] ss:$8 sps:$4 sm:$0xff]   ;;  %v3185_v1 = vld [vmem:[%s4946_s23 + $0x70] ss:$8 sps:$4 sm:$0xff]   ;;  %v3189_v4 = vld [vmem:[%s4946_s23 + $0x64] ss:$8 sps:$4 sm:$0xff]  }
   0xd   :  { %685 = vmatprep.subr.bf16.mxu0 %v3183_v0  ;;  %v3186_v2 = vld [vmem:[%s4946_s23 + $0x174] ss:$8 sps:$4 sm:$0xff]   ;;  %v3188_v3 = vld [vmem:[%s4946_s23 + $0x170] ss:$8 sps:$4 sm:$0xff]   ;;  %v3191_v5 = vld [vmem:[%s4946_s23 + $0x60] ss:$8 sps:$4 sm:$0xff]  }
   0xe   :  { %686 = vmatpush1.bf16.msra.mxu0 %v3185_v1  ;;  %728 = vmatprep.subr.bf16.mxu1 %v3186_v2  ;;  %v3192_v6 = vld [vmem:[%s4946_s23 + $0x164] ss:$8 sps:$4 sm:$0xff]   ;;  %v3194_v7 = vld [vmem:[%s4946_s23 + $0x160] ss:$8 sps:$4 sm:$0xff]   ;;  %v3195_v8 = vld [vmem:[%s4946_s23 + $0x54] ss:$8 sps:$4 sm:$0xff]  }
   0xf   :  { %729 = vmatpush1.bf16.msra.mxu1 %v3188_v3  ;;  %687 = vmatprep.subr.bf16.mxu0 %v3189_v4  ;;  %v3197_v9 = vld [vmem:[%s4946_s23 + $0x50] ss:$8 sps:$4 sm:$0xff]   ;;  %v3198_v10 = vld [vmem:[%s4946_s23 + $0x154] ss:$8 sps:$4 sm:$0xff]   ;;  %v3201_v11 = vld [vmem:[%s4946_s23 + $0x44] ss:$8 sps:$4 sm:$0xff]  }
  0x10   :  { %730 = vmatprep.subr.bf16.mxu1 %v3192_v6  ;;  %v3200_v12 = vld [vmem:[%s4946_s23 + $0x150] ss:$8 sps:$4 sm:$0xff]   ;;  %v3204_v13 = vld [vmem:[%s4946_s23 + $0x144] ss:$8 sps:$4 sm:$0xff]   ;;  %v3203_v14 = vld [vmem:[%s4946_s23 + $0x40] ss:$8 sps:$4 sm:$0xff]  }
  0x11   :  { %v3207_v15 = vld [vmem:[%s4946_s23 + $0x34] ss:$8 sps:$4 sm:$0xff]   ;;  %v3206_v16 = vld [vmem:[%s4946_s23 + $0x140] ss:$8 sps:$4 sm:$0xff]   ;;  %v3209_v18 = vld [vmem:[%s4946_s23 + $0x30] ss:$8 sps:$4 sm:$0xff]  }
  0x12   :  { %688 = vmatpush1.bf16.msra.mxu0 %v3191_v5  ;;  %v3210_v17 = vld [vmem:[%s4946_s23 + $0x134] ss:$8 sps:$4 sm:$0xff]   ;;  %v3213_v19 = vld [vmem:[%s4946_s23 + $0x24] ss:$8 sps:$4 sm:$0xff]   ;;  %v3212_v20 = vld [vmem:[%s4946_s23 + $0x130] ss:$8 sps:$4 sm:$0xff]  }
  0x13   :  { %689 = vmatprep.subr.bf16.mxu0 %v3195_v8  ;;  %731 = vmatpush1.bf16.msra.mxu1 %v3194_v7  ;;  %v3216_v21 = vld [vmem:[%s4946_s23 + $0x124] ss:$8 sps:$4 sm:$0xff]   ;;  %v3215_v22 = vld [vmem:[%s4946_s23 + $0x20] ss:$8 sps:$4 sm:$0xff]   ;;  %v3219_v23 = vld [vmem:[%s4946_s23 + $0x14] ss:$8 sps:$4 sm:$0xff]  }
  0x14   :  { %732 = vmatprep.subr.bf16.mxu1 %v3198_v10  ;;  %v3218_v24 = vld [vmem:[%s4946_s23 + $0x120] ss:$8 sps:$4 sm:$0xff]   ;;  %v3222_v25 = vld [vmem:[%s4946_s23 + $0x114] ss:$8 sps:$4 sm:$0xff]   ;;  %v3221_v26 = vld [vmem:[%s4946_s23 + $0x10] ss:$8 sps:$4 sm:$0xff]  }
  0x15   :  { %v3225_v27 = vld [vmem:[%s4946_s23 + $0x4] ss:$8 sps:$4 sm:$0xff]   ;;  %v3224_v28 = vld [vmem:[%s4946_s23 + $0x110] ss:$8 sps:$4 sm:$0xff]   ;;  %v3227_v30 = vld [vmem:[%s4946_s23] ss:$8 sps:$4 sm:$0xff]  }
  0x16   :  { %690 = vmatpush1.bf16.msra.mxu0 %v3197_v9  ;;  %v3228_v29 = vld [vmem:[%s4946_s23 + $0x104] ss:$8 sps:$4 sm:$0xff]   ;;  %v3231_v31 = vld [vmem:[%s4946_s23 + $0xf4] ss:$8 sps:$4 sm:$0xff]   ;;  %v3230_v32 = vld [vmem:[%s4946_s23 + $0x100] ss:$8 sps:$4 sm:$0xff]  }
  0x17   :  { %691 = vmatprep.subr.bf16.mxu0 %v3201_v11  ;;  %733 = vmatpush1.bf16.msra.mxu1 %v3200_v12  ;;  %v3234_v33 = vld [vmem:[%s4946_s23 + $0x1f4] ss:$8 sps:$4 sm:$0xff]   ;;  %v3233_v34 = vld [vmem:[%s4946_s23 + $0xf0] ss:$8 sps:$4 sm:$0xff]   ;;  %v3237_v35 = vld [vmem:[%s4946_s23 + $0xe4] ss:$8 sps:$4 sm:$0xff]  }
  0x18   :  { %734 = vmatprep.subr.bf16.mxu1 %v3204_v13  ;;  %v3236_v36 = vld [vmem:[%s4946_s23 + $0x1f0] ss:$8 sps:$4 sm:$0xff]   ;;  %v3240_v37 = vld [vmem:[%s4946_s23 + $0x1e4] ss:$8 sps:$4 sm:$0xff]   ;;  %v3239_v38 = vld [vmem:[%s4946_s23 + $0xe0] ss:$8 sps:$4 sm:$0xff]  }
  0x19   :  { %v3243_v39 = vld [vmem:[%s4946_s23 + $0xd4] ss:$8 sps:$4 sm:$0xff]   ;;  %v3242_v40 = vld [vmem:[%s4946_s23 + $0x1e0] ss:$8 sps:$4 sm:$0xff]   ;;  %v3245_v42 = vld [vmem:[%s4946_s23 + $0xd0] ss:$8 sps:$4 sm:$0xff]  }
  0x1a   :  { %692 = vmatpush1.bf16.msra.mxu0 %v3203_v14  ;;  %v3246_v41 = vld [vmem:[%s4946_s23 + $0x1d4] ss:$8 sps:$4 sm:$0xff]   ;;  %v3249_v43 = vld [vmem:[%s4946_s23 + $0xc4] ss:$8 sps:$4 sm:$0xff]   ;;  %v3248_v44 = vld [vmem:[%s4946_s23 + $0x1d0] ss:$8 sps:$4 sm:$0xff]  }
  0x1b   :  { %693 = vmatprep.subr.bf16.mxu0 %v3207_v15  ;;  %735 = vmatpush1.bf16.msra.mxu1 %v3206_v16  ;;  %v3252_v45 = vld [vmem:[%s4946_s23 + $0x1c4] ss:$8 sps:$4 sm:$0xff]   ;;  %v3251_v46 = vld [vmem:[%s4946_s23 + $0xc0] ss:$8 sps:$4 sm:$0xff]   ;;  %v3255_v48 = vld [vmem:[%s4946_s23 + $0xb4] ss:$8 sps:$4 sm:$0xff]  }
  0x1c   :  { %736 = vmatprep.subr.bf16.mxu1 %v3210_v17  ;;  %v3280_v47 = vld [vmem:[%s4947_s2 + $0x4] ss:$24 sps:$4 sm:$0xff]   ;;  %v3254_v49 = vld [vmem:[%s4946_s23 + $0x1c0] ss:$8 sps:$4 sm:$0xff]   ;;  %v3257_v52 = vld [vmem:[%s4946_s23 + $0xb0] ss:$8 sps:$4 sm:$0xff]  }
  0x1d   :  { %717 = vmatprep.mubr.bf16.mxu0 %v3280_v47  ;;  %v3258_v50 = vld [vmem:[%s4946_s23 + $0x1b4] ss:$8 sps:$4 sm:$0xff]   ;;  %v3287_v51 = vld [vmem:[%s4947_s2 + $0xc] ss:$24 sps:$4 sm:$0xff]   ;;  %v3260_v54 = vld [vmem:[%s4946_s23 + $0x1b0] ss:$8 sps:$4 sm:$0xff]  }
  0x1e   :  { %694 = vmatpush1.bf16.msra.mxu0 %v3209_v18  ;;  %v3261_v53 = vld [vmem:[%s4946_s23 + $0xa4] ss:$8 sps:$4 sm:$0xff]   ;;  %760 = vmatprep.mubr.bf16.mxu1 %v3287_v51  ;;  %v3263_v56 = vld [vmem:[%s4946_s23 + $0xa0] ss:$8 sps:$4 sm:$0xff]   ;;  %v3267_v57 = vld [vmem:[%s4946_s23 + $0x94] ss:$8 sps:$4 sm:$0xff]  }
  0x1f   :  { %695 = vmatprep.subr.bf16.mxu0 %v3213_v19  ;;  %737 = vmatpush1.bf16.msra.mxu1 %v3212_v20  ;;  %v3264_v55 = vld [vmem:[%s4946_s23 + $0x1a4] ss:$8 sps:$4 sm:$0xff]   ;;  %v3266_v58 = vld [vmem:[%s4946_s23 + $0x1a0] ss:$8 sps:$4 sm:$0xff]   ;;  %v3270_v59 = vld [vmem:[%s4946_s23 + $0x194] ss:$8 sps:$4 sm:$0xff]  }
  0x20   :  { %738 = vmatprep.subr.bf16.mxu1 %v3216_v21  ;;  %v3269_v60 = vld [vmem:[%s4946_s23 + $0x90] ss:$8 sps:$4 sm:$0xff]   ;;  %v3273_v61 = vld [vmem:[%s4946_s23 + $0x84] ss:$8 sps:$4 sm:$0xff]   ;;  %v3275_v0 = vld [vmem:[%s4946_s23 + $0x80] ss:$8 sps:$4 sm:$0xff]  }
  0x21   :  { %v3272_v62 = vld [vmem:[%s4946_s23 + $0x190] ss:$8 sps:$4 sm:$0xff]   ;;  %v3276_v63 = vld [vmem:[%s4946_s23 + $0x184] ss:$8 sps:$4 sm:$0xff]   ;;  %v3284_v1 = vld [vmem:[%s4946_s23 + $0x274] ss:$8 sps:$4 sm:$0xff]  }
  0x22   :  { %696 = vmatpush1.bf16.msra.mxu0 %v3215_v22  ;;  %v3281_v2 = vld [vmem:[%s4946_s23 + $0x180] ss:$8 sps:$4 sm:$0xff]   ;;  %v3282_v4 = vld [vmem:[%s4946_s23 + $0x270] ss:$8 sps:$4 sm:$0xff]   ;;  %v3290_v6 = vld [vmem:[%s4946_s23 + $0x264] ss:$8 sps:$4 sm:$0xff]  }
  0x23   :  { %697 = vmatprep.subr.bf16.mxu0 %v3219_v23  ;;  %739 = vmatpush1.bf16.msra.mxu1 %v3218_v24  ;;  %v3278_v3 = vld [vmem:[%s4947_s2] ss:$24 sps:$4 sm:$0xff]   ;;  %v3335_v8 = vld [vmem:[%s4947_s2 + $0x14] ss:$24 sps:$4 sm:$0xff]  }
  0x24   :  { %740 = vmatprep.subr.bf16.mxu1 %v3222_v25  ;;  %v3285_v5 = vld [vmem:[%s4947_s2 + $0x8] ss:$24 sps:$4 sm:$0xff]   ;;  %v3293_v9 = vld [vmem:[%s4946_s23 + $0x254] ss:$8 sps:$4 sm:$0xff]   ;;  %v3291_v10 = vld [vmem:[%s4946_s23 + $0x250] ss:$8 sps:$4 sm:$0xff]  }
  0x25   :  { %v3288_v7 = vld [vmem:[%s4946_s23 + $0x260] ss:$8 sps:$4 sm:$0xff]   ;;  %v3296_v11 = vld [vmem:[%s4946_s23 + $0x244] ss:$8 sps:$4 sm:$0xff]   ;;  %v3299_v13 = vld [vmem:[%s4946_s23 + $0x234] ss:$8 sps:$4 sm:$0xff]  }
  0x26   :  { %698 = vmatpush1.bf16.msra.mxu0 %v3221_v26  ;;  %v3294_v12 = vld [vmem:[%s4946_s23 + $0x240] ss:$8 sps:$4 sm:$0xff]   ;;  %v3297_v14 = vld [vmem:[%s4946_s23 + $0x230] ss:$8 sps:$4 sm:$0xff]   ;;  %v3302_v15 = vld [vmem:[%s4946_s23 + $0x224] ss:$8 sps:$4 sm:$0xff]  }
  0x27   :  { %699 = vmatprep.subr.bf16.mxu0 %v3225_v27  ;;  %741 = vmatpush1.bf16.msra.mxu1 %v3224_v28  ;;  %v3300_v16 = vld [vmem:[%s4946_s23 + $0x220] ss:$8 sps:$4 sm:$0xff]   ;;  %v3305_v17 = vld [vmem:[%s4946_s23 + $0x214] ss:$8 sps:$4 sm:$0xff]   ;;  %v3303_v18 = vld [vmem:[%s4946_s23 + $0x210] ss:$8 sps:$4 sm:$0xff]  }
  0x28   :  { %742 = vmatprep.subr.bf16.mxu1 %v3228_v29  ;;  %v3308_v19 = vld [vmem:[%s4946_s23 + $0x204] ss:$8 sps:$4 sm:$0xff]   ;;  %v3306_v20 = vld [vmem:[%s4946_s23 + $0x200] ss:$8 sps:$4 sm:$0xff]   ;;  %v3311_v21 = vld [vmem:[%s4946_s23 + $0x2f4] ss:$8 sps:$4 sm:$0xff]  }
  0x29   :  { %v3309_v22 = vld [vmem:[%s4946_s23 + $0x2f0] ss:$8 sps:$4 sm:$0xff]   ;;  %v3314_v23 = vld [vmem:[%s4946_s23 + $0x2e4] ss:$8 sps:$4 sm:$0xff]   ;;  %v3312_v24 = vld [vmem:[%s4946_s23 + $0x2e0] ss:$8 sps:$4 sm:$0xff]  }
  0x2a   :  { %700 = vmatpush1.bf16.msra.mxu0 %v3227_v30  ;;  %v3317_v25 = vld [vmem:[%s4946_s23 + $0x2d4] ss:$8 sps:$4 sm:$0xff]   ;;  %v3315_v26 = vld [vmem:[%s4946_s23 + $0x2d0] ss:$8 sps:$4 sm:$0xff]   ;;  %v3320_v27 = vld [vmem:[%s4946_s23 + $0x2c4] ss:$8 sps:$4 sm:$0xff]  }
  0x2b   :  { %701 = vmatprep.subr.bf16.mxu0 %v3231_v31  ;;  %743 = vmatpush1.bf16.msra.mxu1 %v3230_v32  ;;  %v3318_v28 = vld [vmem:[%s4946_s23 + $0x2c0] ss:$8 sps:$4 sm:$0xff]   ;;  %v3323_v29 = vld [vmem:[%s4946_s23 + $0x2b4] ss:$8 sps:$4 sm:$0xff]   ;;  %v3321_v30 = vld [vmem:[%s4946_s23 + $0x2b0] ss:$8 sps:$4 sm:$0xff]  }
  0x2c   :  { %744 = vmatprep.subr.bf16.mxu1 %v3234_v33  ;;  %v3326_v31 = vld [vmem:[%s4946_s23 + $0x2a4] ss:$8 sps:$4 sm:$0xff]   ;;  %v3324_v32 = vld [vmem:[%s4946_s23 + $0x2a0] ss:$8 sps:$4 sm:$0xff]   ;;  %v3329_v33 = vld [vmem:[%s4946_s23 + $0x294] ss:$8 sps:$4 sm:$0xff]  }
  0x2d   :  { %v3348_v47 = vld [vmem:[%s4948_s6 + $0x30] ss:$8 sps:$4 sm:$0xff]  }
  0x2e   :  { %702 = vmatpush2.bf16.msra.mxu0 %v3233_v34  ;;  %v3327_v34 = vld [vmem:[%s4946_s23 + $0x290] ss:$8 sps:$4 sm:$0xff]  }
  0x2f   :  { %703 = vmatprep.subr.bf16.mxu0 %v3237_v35  ;;  %745 = vmatpush2.bf16.msra.mxu1 %v3236_v36  ;;  %v3332_v35 = vld [vmem:[%s4946_s23 + $0x284] ss:$8 sps:$4 sm:$0xff]   ;;  %v3330_v36 = vld [vmem:[%s4946_s23 + $0x280] ss:$8 sps:$4 sm:$0xff]   ;;  %v3354_v51 = vld [vmem:[%s4948_s6 + $0x10] ss:$8 sps:$4 sm:$0xff]  }
  0x30   :  { %746 = vmatprep.subr.bf16.mxu1 %v3240_v37  ;;  %v3333_v37 = vld [vmem:[%s4947_s2 + $0x10] ss:$24 sps:$4 sm:$0xff]  }
  0x32   :  { %704 = vmatpush2.bf16.msra.mxu0 %v3239_v38  ;;  %v3336_v38 = vld [vmem:[%s4948_s6 + $0x70] ss:$8 sps:$4 sm:$0xff]  }
  0x33   :  { %705 = vmatprep.subr.bf16.mxu0 %v3243_v39  ;;  %747 = vmatpush2.bf16.msra.mxu1 %v3242_v40  ;;  %v3338_v39 = vld [vmem:[%s4948_s6 + $0x74] ss:$8 sps:$4 sm:$0xff]   ;;  %v3341_v40 = vld [vmem:[%s4948_s6 + $0x64] ss:$8 sps:$4 sm:$0xff]  }
  0x34   :  { %748 = vmatprep.subr.bf16.mxu1 %v3246_v41  ;;  %v3339_v41 = vld [vmem:[%s4948_s6 + $0x60] ss:$8 sps:$4 sm:$0xff]  }
  0x36   :  { %706 = vmatpush2.bf16.msra.mxu0 %v3245_v42  ;;  %v3344_v42 = vld [vmem:[%s4948_s6 + $0x54] ss:$8 sps:$4 sm:$0xff]  }
  0x37   :  { %707 = vmatprep.subr.bf16.mxu0 %v3249_v43  ;;  %749 = vmatpush2.bf16.msra.mxu1 %v3248_v44  ;;  %v3342_v43 = vld [vmem:[%s4948_s6 + $0x50] ss:$8 sps:$4 sm:$0xff]   ;;  %v3347_v44 = vld [vmem:[%s4948_s6 + $0x44] ss:$8 sps:$4 sm:$0xff]  }
  0x38   :  { %750 = vmatprep.subr.bf16.mxu1 %v3252_v45  ;;  %v3345_v45 = vld [vmem:[%s4948_s6 + $0x40] ss:$8 sps:$4 sm:$0xff]  }
  0x3a   :  { %708 = vmatpush2.bf16.msra.mxu0 %v3251_v46  ;;  %v3350_v46 = vld [vmem:[%s4948_s6 + $0x34] ss:$8 sps:$4 sm:$0xff]  }
  0x3b   :  { %709 = vmatprep.subr.bf16.mxu0 %v3255_v48  ;;  %751 = vmatpush2.bf16.msra.mxu1 %v3254_v49  ;;  %v3353_v48 = vld [vmem:[%s4948_s6 + $0x24] ss:$8 sps:$4 sm:$0xff]   ;;  %v3351_v49 = vld [vmem:[%s4948_s6 + $0x20] ss:$8 sps:$4 sm:$0xff]  }
  0x3c   :  { %752 = vmatprep.subr.bf16.mxu1 %v3258_v50  ;;  %v3356_v50 = vld [vmem:[%s4948_s6 + $0x14] ss:$8 sps:$4 sm:$0xff]  }
  0x3e   :  { %710 = vmatpush2.bf16.msra.mxu0 %v3257_v52  ;;  %v3359_v52 = vld [vmem:[%s4948_s6 + $0x4] ss:$8 sps:$4 sm:$0xff]  }
  0x3f   :  { %711 = vmatprep.subr.bf16.mxu0 %v3261_v53  ;;  %753 = vmatpush2.bf16.msra.mxu1 %v3260_v54  ;;  %v3357_v53 = vld [vmem:[%s4948_s6] ss:$8 sps:$4 sm:$0xff]   ;;  %v3362_v54 = vld [vmem:[%s4948_s6 + $0xf4] ss:$8 sps:$4 sm:$0xff]  }
  0x40   :  { %754 = vmatprep.subr.bf16.mxu1 %v3264_v55  ;;  %v3360_v55 = vld [vmem:[%s4948_s6 + $0xf0] ss:$8 sps:$4 sm:$0xff]  }
  0x42   :  { %712 = vmatpush2.bf16.msra.mxu0 %v3263_v56  ;;  %v3365_v56 = vld [vmem:[%s4948_s6 + $0xe4] ss:$8 sps:$4 sm:$0xff]  }
  0x43   :  { %713 = vmatprep.subr.bf16.mxu0 %v3267_v57  ;;  %755 = vmatpush2.bf16.msra.mxu1 %v3266_v58  ;;  %v3363_v57 = vld [vmem:[%s4948_s6 + $0xe0] ss:$8 sps:$4 sm:$0xff]   ;;  %v3368_v58 = vld [vmem:[%s4948_s6 + $0xd4] ss:$8 sps:$4 sm:$0xff]  }
  0x44   :  { %756 = vmatprep.subr.bf16.mxu1 %v3270_v59  ;;  %v3366_v59 = vld [vmem:[%s4948_s6 + $0xd0] ss:$8 sps:$4 sm:$0xff]  }
  0x46   :  { %714 = vmatpush2.bf16.msra.mxu0 %v3269_v60  ;;  %v3371_v60 = vld [vmem:[%s4948_s6 + $0xc4] ss:$8 sps:$4 sm:$0xff]  }
  0x47   :  { %715 = vmatprep.subr.bf16.mxu0 %v3273_v61  ;;  %757 = vmatpush2.bf16.msra.mxu1 %v3272_v62  ;;  %v3369_v61 = vld [vmem:[%s4948_s6 + $0xc0] ss:$8 sps:$4 sm:$0xff]   ;;  %v3374_v62 = vld [vmem:[%s4948_s6 + $0xb4] ss:$8 sps:$4 sm:$0xff]  }
  0x48   :  { %758 = vmatprep.subr.bf16.mxu1 %v3276_v63  ;;  %v3372_v63 = vld [vmem:[%s4948_s6 + $0xb0] ss:$8 sps:$4 sm:$0xff]  }
  0x4a   :  { %716 = vmatpush2.bf16.msra.mxu0 %v3275_v0  ;;  %v3377_v0 = vld [vmem:[%s4948_s6 + $0xa4] ss:$8 sps:$4 sm:$0xff]  }
  0x4b   :  { %771 = vmatprep.subr.bf16.mxu0 %v3284_v1  ;;  %759 = vmatpush2.bf16.msra.mxu1 %v3281_v2  ;;  %v3375_v1 = vld [vmem:[%s4948_s6 + $0xa0] ss:$8 sps:$4 sm:$0xff]   ;;  %v3380_v2 = vld [vmem:[%s4948_s6 + $0x94] ss:$8 sps:$4 sm:$0xff]  }
  0x4c   :  { %1066 = vmatprep.subr.bf16.mxu1 %v3338_v39 }
  0x4d   :  { %718 = vmatmul.mubr.bf16.vlgmr.msra.gmra.mxu0 %v3278_v3  ;;  %v3378_v3 = vld [vmem:[%s4948_s6 + $0x90] ss:$8 sps:$4 sm:$0xff]  }
  0x4e   :  { %772 = vmatpush1.bf16.msra.mxu0 %v3282_v4  ;;  %761 = vmatmul.mubr.bf16.vlgmr.msra.gmra.mxu1 %v3285_v5  ;;  %v3383_v4 = vld [vmem:[%s4948_s6 + $0x84] ss:$8 sps:$4 sm:$0xff]   ;;  %v3381_v5 = vld [vmem:[%s4948_s6 + $0x80] ss:$8 sps:$4 sm:$0xff]  }
  0x4f   :  { %773 = vmatprep.subr.bf16.mxu0 %v3290_v6  ;;  %803 = vmatprep.mubr.bf16.mxu0 %v3335_v8  ;;  %v3384_v6 = vld [vmem:[%s4949_s21 + $0x78] sm:$0xff]  }
  0x50   :  { %1067 = vmatpush1.bf16.msra.mxu1 %v3336_v38 }
  0x51   :  { %1068 = vmatprep.subr.bf16.mxu1 %v3341_v40 }
  0x52   :  { %774 = vmatpush1.bf16.msra.mxu0 %v3288_v7  ;;  %v165_v7 = vlaneseq }
  0x53   :  { %775 = vmatprep.subr.bf16.mxu0 %v3293_v9 }
  0x54   :  { %1069 = vmatpush1.bf16.msra.mxu1 %v3339_v41  ;;  %v166_v9 = vshrl.u32 %v165_v7, 7 }
  0x55   :  { %1070 = vmatprep.subr.bf16.mxu1 %v3344_v42 }
  0x56   :  { %776 = vmatpush1.bf16.msra.mxu0 %v3291_v10 }
  0x57   :  { %777 = vmatprep.subr.bf16.mxu0 %v3296_v11 }
  0x58   :  { %1071 = vmatpush1.bf16.msra.mxu1 %v3342_v43 }
  0x59   :  { %1072 = vmatprep.subr.bf16.mxu1 %v3347_v44 }
  0x5a   :  { %778 = vmatpush1.bf16.msra.mxu0 %v3294_v12  ;;  %v4192_v12 = vsub.s32 1, %v166_v9 }
  0x5b   :  { %779 = vmatprep.subr.bf16.mxu0 %v3299_v13  ;;  %v163_v13 = vld [vmem:[%s4950_s24] sm:$0x3] }
  0x5c   :  { %1073 = vmatpush1.bf16.msra.mxu1 %v3345_v45  ;;  %v3385_v45 = vld [vmem:[%s4949_s21 + $0x38] sm:$0xff]  }
  0x5d   :  { %1074 = vmatprep.subr.bf16.mxu1 %v3350_v46 }
  0x5e   :  { %780 = vmatpush1.bf16.msra.mxu0 %v3297_v14  ;;  %v4197_v14 = vsub.s32 0, %v166_v9  ;;  %v3417_v9 = vld [vmem:[%s4923_s8 + $0x154] ss:$8 sps:$4 sm:$0xff]  }
  0x5f   :  { %781 = vmatprep.subr.bf16.mxu0 %v3302_v15 }
  0x60   :  { %1075 = vmatpush1.bf16.msra.mxu1 %v3348_v47 }
  0x61   :  { %1076 = vmatprep.subr.bf16.mxu1 %v3353_v48 }
  0x62   :  { %782 = vmatpush1.bf16.msra.mxu0 %v3300_v16 }
  0x63   :  { %783 = vmatprep.subr.bf16.mxu0 %v3305_v17  ;;  %v172_v17 = vrot.slane %v163_v13, %v4192_v12 }
  0x64   :  { %1077 = vmatpush1.bf16.msra.mxu1 %v3351_v49  ;;  %v3386_v49 = vld [vmem:[%s4949_s21 + $0x70] sm:$0xff]  }
  0x65   :  { %1078 = vmatprep.subr.bf16.mxu1 %v3356_v50 }
  0x66   :  { %784 = vmatpush1.bf16.msra.mxu0 %v3303_v18  ;;  %v168_v18 = vrot.slane %v163_v13, %v4197_v14  ;;  %v3421_v13 = vld [vmem:[%s4923_s8 + $0x140] ss:$8 sps:$4 sm:$0xff]  }
  0x67   :  { %785 = vmatprep.subr.bf16.mxu0 %v3308_v19 }
  0x68   :  { %1079 = vmatpush1.bf16.msra.mxu1 %v3354_v51  ;;  %v3387_v51 = vld [vmem:[%s4949_s21 + $0x30] sm:$0xff]  }
  0x69   :  { %1080 = vmatprep.subr.bf16.mxu1 %v3359_v52 }
  0x6a   :  { %786 = vmatpush1.bf16.msra.mxu0 %v3306_v20 }
  0x6b   :  { %787 = vmatprep.subr.bf16.mxu0 %v3311_v21 }
  0x6c   :  { %1081 = vmatpush1.bf16.msra.mxu1 %v3357_v53 }
  0x6d   :  { %1082 = vmatprep.subr.bf16.mxu1 %v3362_v54  ;;  %v3388_v54 = vld [vmem:[%s4949_s21 + $0x68] sm:$0xff]  }
  0x6e   :  { %788 = vmatpush2.bf16.msra.mxu0 %v3309_v22 }
  0x6f   :  { %789 = vmatprep.subr.bf16.mxu0 %v3314_v23 }
  0x70   :  { %1083 = vmatpush2.bf16.msra.mxu1 %v3360_v55  ;;  %v3389_v55 = vld [vmem:[%s4949_s21 + $0x28] sm:$0xff]  }
  0x71   :  { %1084 = vmatprep.subr.bf16.mxu1 %v3365_v56 }
  0x72   :  { %790 = vmatpush2.bf16.msra.mxu0 %v3312_v24 }
  0x73   :  { %791 = vmatprep.subr.bf16.mxu0 %v3317_v25 }
  0x74   :  { %1085 = vmatpush2.bf16.msra.mxu1 %v3363_v57  ;;  %v3390_v57 = vld [vmem:[%s4949_s21 + $0x60] sm:$0xff]  }
  0x75   :  { %1086 = vmatprep.subr.bf16.mxu1 %v3368_v58  ;;  %v3391_v58 = vld [vmem:[%s4949_s21 + $0x20] sm:$0xff]  }
  0x76   :  { %792 = vmatpush2.bf16.msra.mxu0 %v3315_v26 }
  0x77   :  { %793 = vmatprep.subr.bf16.mxu0 %v3320_v27 }
  0x78   :  { %1087 = vmatpush2.bf16.msra.mxu1 %v3366_v59  ;;  %v3392_v59 = vld [vmem:[%s4949_s21 + $0x58] sm:$0xff]  }
  0x79   :  { %1088 = vmatprep.subr.bf16.mxu1 %v3371_v60  ;;  %v3393_v60 = vld [vmem:[%s4949_s21 + $0x18] sm:$0xff]  }
  0x7a   :  { %794 = vmatpush2.bf16.msra.mxu0 %v3318_v28 }
  0x7b   :  { %795 = vmatprep.subr.bf16.mxu0 %v3323_v29 }
  0x7c   :  { %1089 = vmatpush2.bf16.msra.mxu1 %v3369_v61  ;;  %v3394_v61 = vld [vmem:[%s4949_s21 + $0x50] sm:$0xff]  }
  0x7d   :  { %1090 = vmatprep.subr.bf16.mxu1 %v3374_v62  ;;  %v3395_v62 = vld [vmem:[%s4949_s21 + $0x10] sm:$0xff]  }
  0x7e   :  { %796 = vmatpush2.bf16.msra.mxu0 %v3321_v30  ;;  %v818_v30 = vld [vmem:[%s4921_s14] sm:$0x3] }
  0x7f   :  { %797 = vmatprep.subr.bf16.mxu0 %v3326_v31  ;;  %v834_v31 = vld [vmem:[%s4922_s15] sm:$0x3]  ;;  %v823_v46 = vrot.slane %v818_v30, %v4197_v14 }
  0x80   :  { %1091 = vmatpush2.bf16.msra.mxu1 %v3372_v63  ;;  %v839_v47 = vrot.slane %v834_v31, %v4197_v14  ;;  %v3396_v63 = vld [vmem:[%s4949_s21 + $0x48] sm:$0xff]  }
  0x81   :  { %1092 = vmatprep.subr.bf16.mxu1 %v3377_v0  ;;  %v3397_v0 = vld [vmem:[%s4949_s21 + $0x8] sm:$0xff]  }
  0x82   :  { %798 = vmatpush2.bf16.msra.mxu0 %v3324_v32 }
  0x83   :  { %799 = vmatprep.subr.bf16.mxu0 %v3329_v33 }
  0x84   :  { %1093 = vmatpush2.bf16.msra.mxu1 %v3375_v1  ;;  %v3398_v1 = vld [vmem:[%s4949_s21 + $0x40] sm:$0xff]  }
  0x85   :  { %1094 = vmatprep.subr.bf16.mxu1 %v3380_v2  ;;  %v3399_v2 = vld [vmem:[%s4949_s21] sm:$0xff]  }
  0x86   :  { %800 = vmatpush2.bf16.msra.mxu0 %v3327_v34  ;;  %v827_v34 = vrot.slane %v818_v30, %v4192_v12  ;;  %v3469_v30 = vld [vmem:[%s4923_s8 + $0x1c0] ss:$8 sps:$4 sm:$0xff]  }
  0x87   :  { %801 = vmatprep.subr.bf16.mxu0 %v3332_v35  ;;  %v843_v35 = vrot.slane %v834_v31, %v4192_v12  ;;  %v3477_v31 = vld [vmem:[%s4923_s8 + $0x1b4] ss:$8 sps:$4 sm:$0xff]  }
  0x88   :  { %1095 = vmatpush2.bf16.msra.mxu1 %v3378_v3  ;;  %v3402_v3 = vld [vmem:[%s4923_s8 + $0x74] ss:$8 sps:$4 sm:$0xff]  }
  0x89   :  { %1096 = vmatprep.subr.bf16.mxu1 %v3383_v4  ;;  %v3405_v4 = vld [vmem:[%s4923_s8 + $0x174] ss:$8 sps:$4 sm:$0xff]  }
  0x8a   :  { %802 = vmatpush2.bf16.msra.mxu0 %v3330_v36 }
  0x8b   :  { %1992 = vmatprep.subr.bf16.mxu0 %v3405_v4 }
  0x8c   :  { %1097 = vmatpush2.bf16.msra.mxu1 %v3381_v5  ;;  %v3403_v5 = vld [vmem:[%s4923_s8 + $0x170] ss:$8 sps:$4 sm:$0xff]  }
  0x8d   :  { %804 = vmatmul.mubr.bf16.vlgmr.msra.gmra.mxu0 %v3333_v37  ;;  %3132 = vmatprep.subr.bf16.mxu1 %v3384_v6  ;;  %v3411_v6 = vld [vmem:[%s4923_s8 + $0x164] ss:$8 sps:$4 sm:$0xff]  }
  0x8e   :  { %1993 = vmatpush1.bf16.msra.mxu0 %v3403_v5  ;;  %v3406_v5 = vld [vmem:[%s4923_s8 + $0x60] ss:$8 sps:$4 sm:$0xff]  }
  0x8f   :  { %1994 = vmatprep.subr.bf16.mxu0 %v3411_v6 }
 0x10d   :  { %v719_v8 = vpop.f32.mrf.mxu0 }
 0x10e   :  { %v762_v11 = vpop.f32.mrf.mxu1  ;;  %v720_v25 = vadd.f32 %v719_v8, %v168_v18  ;;  %v3409_v8 = vld [vmem:[%s4923_s8 + $0x160] ss:$8 sps:$4 sm:$0xff]  }
 0x10f   :  { %v721_v10 = vpop.f32.mrf.mxu0  ;;  %1995 = vmatpush1.bf16.msra.mxu0 %v3409_v8  ;;  %v3414_v8 = vld [vmem:[%s4923_s8 + $0x54] ss:$8 sps:$4 sm:$0xff]  }
 0x110   :  { %v764_v16 = vpop.f32.mrf.mxu1  ;;  %v722_v23 = vadd.f32 %v721_v10, %v172_v17  ;;  %v763_v36 = vadd.f32 %v762_v11, %v720_v25  ;;  %v3415_v10 = vld [vmem:[%s4923_s8 + $0x150] ss:$8 sps:$4 sm:$0xff]   ;;  %1996 = vmatprep.subr.bf16.mxu0 %v3417_v9  ;;  %v3423_v11 = vld [vmem:[%s4923_s8 + $0x144] ss:$8 sps:$4 sm:$0xff]  }
 0x111   :  { %v723_v15 = vpop.f32.mrf.mxu0  ;;  %v3459_v25 = vld [vmem:[%s4923_s8 + $0x1e4] ss:$8 sps:$4 sm:$0xff]  }
 0x112   :  { %v766_v20 = vpop.f32.mrf.mxu1  ;;  %v724_v21 = vadd.f32 %v723_v15, %v168_v18  ;;  %v765_v32 = vadd.f32 %v764_v16, %v722_v23  ;;  %v3429_v15 = vld [vmem:[%s4923_s8 + $0x134] ss:$8 sps:$4 sm:$0xff]   ;;  %v3427_v16 = vld [vmem:[%s4923_s8 + $0x130] ss:$8 sps:$4 sm:$0xff]   ;;  %v3433_v18 = vld [vmem:[%s4923_s8 + $0x120] ss:$8 sps:$4 sm:$0xff]  }
 0x113   :  { %v725_v19 = vpop.f32.mrf.mxu0  ;;  %1997 = vmatpush1.bf16.msra.mxu0 %v3415_v10  ;;  %v3453_v23 = vld [vmem:[%s4923_s8 + $0x1f4] ss:$8 sps:$4 sm:$0xff]   ;;  %v4378_v9 = vld [vmem:[%s4924_s1] sm:$0xff] }
 0x114   :  { %v726_v24 = vadd.f32 %v725_v19, %v172_v17  ;;  %v768_v26 = vpop.f32.mrf.mxu1  ;;  %v767_v28 = vadd.f32 %v766_v20, %v724_v21  ;;  %1998 = vmatprep.subr.bf16.mxu0 %v3423_v11  ;;  %v3435_v17 = vld [vmem:[%s4923_s8 + $0x124] ss:$8 sps:$4 sm:$0xff]   ;;  %v3441_v19 = vld [vmem:[%s4923_s8 + $0x114] ss:$8 sps:$4 sm:$0xff]   ;;  %v3439_v20 = vld [vmem:[%s4923_s8 + $0x110] ss:$8 sps:$4 sm:$0xff]  }
 0x115   :  { %v3447_v21 = vld [vmem:[%s4923_s8 + $0x104] ss:$8 sps:$4 sm:$0xff]  }
 0x116   :  { %v769_v33 = vadd.f32 %v768_v26, %v726_v24  ;;  %v3451_v24 = vld [vmem:[%s4923_s8 + $0x1f0] ss:$8 sps:$4 sm:$0xff]   ;;  %v3457_v26 = vld [vmem:[%s4923_s8 + $0x1e0] ss:$8 sps:$4 sm:$0xff]  }
 0x117   :  { %1999 = vmatpush1.bf16.msra.mxu0 %v3421_v13 }
 0x118   :  { %2000 = vmatprep.subr.bf16.mxu0 %v3429_v15 }
 0x11b   :  { %2001 = vmatpush1.bf16.msra.mxu0 %v3427_v16  ;;  %v3412_v16 = vld [vmem:[%s4923_s8 + $0x50] ss:$8 sps:$4 sm:$0xff]  }
 0x11c   :  { %2002 = vmatprep.subr.bf16.mxu0 %v3435_v17  ;;  %v2954_v17 = vcombine.high %v4378_v9, %v4378_v9 }
 0x11f   :  { %2003 = vmatpush1.bf16.msra.mxu0 %v3433_v18 }
 0x120   :  { %2004 = vmatprep.subr.bf16.mxu0 %v3441_v19  ;;  %v3420_v19 = vld [vmem:[%s4923_s8 + $0x44] ss:$8 sps:$4 sm:$0xff]  }
 0x123   :  { %2005 = vmatpush1.bf16.msra.mxu0 %v3439_v20  ;;  %v3418_v20 = vld [vmem:[%s4923_s8 + $0x40] ss:$8 sps:$4 sm:$0xff]  }
 0x124   :  { %2006 = vmatprep.subr.bf16.mxu0 %v3447_v21  ;;  %v3426_v21 = vld [vmem:[%s4923_s8 + $0x34] ss:$8 sps:$4 sm:$0xff]  }
 0x14d   :  { %v805_v22 = vpop.f32.mrf.mxu0 }
 0x14e   :  { %v806_v41 = vadd.f32 %v805_v22, %v763_v36  ;;  %v3445_v22 = vld [vmem:[%s4923_s8 + $0x100] ss:$8 sps:$4 sm:$0xff]   ;;  %v3487_v36 = vld [vmem:[%s4923_s8 + $0x190] ss:$8 sps:$4 sm:$0xff]  }
 0x14f   :  { %v807_v27 = vpop.f32.mrf.mxu0  ;;  %2007 = vmatpush1.bf16.msra.mxu0 %v3445_v22  ;;  %v3424_v22 = vld [vmem:[%s4923_s8 + $0x30] ss:$8 sps:$4 sm:$0xff]  }
 0x150   :  { %v808_v39 = vadd.f32 %v807_v27, %v765_v32  ;;  %2008 = vmatprep.subr.bf16.mxu0 %v3453_v23  ;;  %v3465_v27 = vld [vmem:[%s4923_s8 + $0x1d4] ss:$8 sps:$4 sm:$0xff]   ;;  %v3475_v32 = vld [vmem:[%s4923_s8 + $0x1b0] ss:$8 sps:$4 sm:$0xff]   ;;  %v3432_v23 = vld [vmem:[%s4923_s8 + $0x24] ss:$8 sps:$4 sm:$0xff]  }
 0x151   :  { %v809_v29 = vpop.f32.mrf.mxu0 }
 0x152   :  { %v810_v37 = vadd.f32 %v809_v29, %v767_v28  ;;  %v3463_v28 = vld [vmem:[%s4923_s8 + $0x1d0] ss:$8 sps:$4 sm:$0xff]   ;;  %v3471_v29 = vld [vmem:[%s4923_s8 + $0x1c4] ss:$8 sps:$4 sm:$0xff]  }
 0x153   :  { %v811_v38 = vpop.f32.mrf.mxu0  ;;  %2009 = vmatpush2.bf16.msra.mxu0 %v3451_v24  ;;  %v3430_v24 = vld [vmem:[%s4923_s8 + $0x20] ss:$8 sps:$4 sm:$0xff]  }
 0x154   :  { %v812_v40 = vadd.f32 %v811_v38, %v769_v33  ;;  %v858_v48 = vpack.c.bf16 %v810_v37, %v806_v41  ;;  %v830_v52 = vmul.f32 %v823_v46, %v810_v37  ;;  %v846_v53 = vmul.f32 %v839_v47, %v810_v37  ;;  %2010 = vmatprep.subr.bf16.mxu0 %v3459_v25  ;;  %v3483_v33 = vld [vmem:[%s4923_s8 + $0x1a4] ss:$8 sps:$4 sm:$0xff]   ;;  %v3493_v38 = vld [vmem:[%s4923_s8 + $0x180] ss:$8 sps:$4 sm:$0xff]   ;;  %v3438_v25 = vld [vmem:[%s4923_s8 + $0x14] ss:$8 sps:$4 sm:$0xff]  }
 0x155   :  { %v3495_v37 = vld [vmem:[%s4923_s8 + $0x184] ss:$8 sps:$4 sm:$0xff]  }
 0x156   :  { %v831_v42 = vmul.f32 %v827_v34, %v812_v40  ;;  %v847_v43 = vmul.f32 %v843_v35, %v812_v40  ;;  %v859_v44 = vpack.c.bf16 %v812_v40, %v808_v39  ;;  %v860_v56 = vpack.c.bf16 %v846_v53, %v830_v52  ;;  %v3481_v34 = vld [vmem:[%s4923_s8 + $0x1a0] ss:$8 sps:$4 sm:$0xff]   ;;  %v3489_v35 = vld [vmem:[%s4923_s8 + $0x194] ss:$8 sps:$4 sm:$0xff]  }
 0x157   :  { %2011 = vmatpush2.bf16.msra.mxu0 %v3457_v26  ;;  %v1340_v39 = vld [vmem:[%s4924_s1 + $0x8] sm:$0xff]  ;;  %v3436_v26 = vld [vmem:[%s4923_s8 + $0x10] ss:$8 sps:$4 sm:$0xff]  }
 0x158   :  { %1098 = vmatprep.mubr.bf16.mxu1 %v859_v44  ;;  %v861_v50 = vpack.c.bf16 %v847_v43, %v831_v42  ;;  %2012 = vmatprep.subr.bf16.mxu0 %v3465_v27  ;;  %v2956_v40 = vcombine.high %v1340_v39, %v1340_v39  ;;  %v2955_v41 = vcombine.low %v1340_v39, %v1340_v39  ;;  %v894_v42 = vld [vmem:[%s4925_s5] sm:$0x3]  ;;  %v3444_v27 = vld [vmem:[%s4923_s8 + $0x4] ss:$8 sps:$4 sm:$0xff]  }
 0x159   :  { %1099 = vmatmul.mubr.bf16.vlgmr.msra.gmra.mxu1 %v858_v48  ;;  %v903_v44 = vrot.slane %v894_v42, %v4192_v12  ;;  %v3480_v39 = vld [vmem:[%s4923_s8 + $0xa4] ss:$8 sps:$4 sm:$0xff]  }
 0x15a   :  { %1108 = vmatprep.mubr.bf16.mxu1 %v861_v50  ;;  %3133 = vmatpush3.bf16.msra.mxu1 %v3385_v45  ;;  %v899_v45 = vrot.slane %v894_v42, %v4197_v14  ;;  %v3484_v42 = vld [vmem:[%s4923_s8 + $0x90] ss:$8 sps:$4 sm:$0xff]  }
 0x15b   :  { %3134 = vmatprep.subr.bf16.mxu1 %v3386_v49  ;;  %2013 = vmatpush2.bf16.msra.mxu0 %v3463_v28  ;;  %v3442_v28 = vld [vmem:[%s4923_s8] ss:$8 sps:$4 sm:$0xff]  }
 0x15c   :  { %2014 = vmatprep.subr.bf16.mxu0 %v3471_v29  ;;  %2024 = vmatprep.mubr.bf16.mxu0 %v2956_v40  ;;  %v3450_v29 = vld [vmem:[%s4923_s8 + $0xf4] ss:$8 sps:$4 sm:$0xff]   ;;  %v3478_v40 = vld [vmem:[%s4923_s8 + $0xa0] ss:$8 sps:$4 sm:$0xff]  }
 0x15e   :  { %3135 = vmatpush3.bf16.msra.mxu1 %v3387_v51 }
 0x15f   :  { %3136 = vmatprep.subr.bf16.mxu1 %v3388_v54  ;;  %2015 = vmatpush2.bf16.msra.mxu0 %v3469_v30  ;;  %v3448_v30 = vld [vmem:[%s4923_s8 + $0xf0] ss:$8 sps:$4 sm:$0xff]  }
 0x160   :  { %2016 = vmatprep.subr.bf16.mxu0 %v3477_v31  ;;  %v3456_v31 = vld [vmem:[%s4923_s8 + $0xe4] ss:$8 sps:$4 sm:$0xff]  }
 0x161   :  { %1109 = vmatmul.mubr.bf16.gmra.mxu1 %v860_v56 }
 0x162   :  { %3137 = vmatpush3.bf16.msra.mxu1 %v3389_v55 }
 0x163   :  { %3138 = vmatprep.subr.bf16.mxu1 %v3390_v57  ;;  %2017 = vmatpush2.bf16.msra.mxu0 %v3475_v32  ;;  %v3454_v32 = vld [vmem:[%s4923_s8 + $0xe0] ss:$8 sps:$4 sm:$0xff]  }
 0x164   :  { %2018 = vmatprep.subr.bf16.mxu0 %v3483_v33  ;;  %v3462_v33 = vld [vmem:[%s4923_s8 + $0xd4] ss:$8 sps:$4 sm:$0xff]  }
 0x166   :  { %3139 = vmatpush3.bf16.msra.mxu1 %v3391_v58 }
 0x167   :  { %3140 = vmatprep.subr.bf16.mxu1 %v3392_v59  ;;  %2019 = vmatpush2.bf16.msra.mxu0 %v3481_v34  ;;  %v3460_v34 = vld [vmem:[%s4923_s8 + $0xd0] ss:$8 sps:$4 sm:$0xff]  }
 0x168   :  { %2020 = vmatprep.subr.bf16.mxu0 %v3489_v35  ;;  %v3468_v35 = vld [vmem:[%s4923_s8 + $0xc4] ss:$8 sps:$4 sm:$0xff]  }
 0x16a   :  { %3141 = vmatpush3.bf16.msra.mxu1 %v3393_v60  ;;  %v3400_v60 = vld [vmem:[%s4923_s8 + $0x70] ss:$8 sps:$4 sm:$0xff]  }
 0x16b   :  { %3142 = vmatprep.subr.bf16.mxu1 %v3394_v61  ;;  %2021 = vmatpush2.bf16.msra.mxu0 %v3487_v36  ;;  %v3466_v36 = vld [vmem:[%s4923_s8 + $0xc0] ss:$8 sps:$4 sm:$0xff]  }
 0x16c   :  { %2022 = vmatprep.subr.bf16.mxu0 %v3495_v37  ;;  %v3474_v37 = vld [vmem:[%s4923_s8 + $0xb4] ss:$8 sps:$4 sm:$0xff]  }
 0x16e   :  { %3143 = vmatpush3.bf16.msra.mxu1 %v3395_v62 }
 0x16f   :  { %3144 = vmatprep.subr.bf16.mxu1 %v3396_v63  ;;  %2023 = vmatpush2.bf16.msra.mxu0 %v3493_v38  ;;  %v3408_v63 = vld [vmem:[%s4923_s8 + $0x64] ss:$8 sps:$4 sm:$0xff]   ;;  %v3472_v38 = vld [vmem:[%s4923_s8 + $0xb0] ss:$8 sps:$4 sm:$0xff]  }
 0x172   :  { %3145 = vmatpush3.bf16.msra.mxu1 %v3397_v0  ;;  %2025 = vmatmul.mubr.bf16.vlgmr.msra.gmra.mxu0 %v2955_v41  ;;  %v3486_v41 = vld [vmem:[%s4923_s8 + $0x94] ss:$8 sps:$4 sm:$0xff]  }
 0x173   :  { %3146 = vmatprep.subr.bf16.mxu1 %v3398_v1 }
 0x176   :  { %3147 = vmatpush3.bf16.msra.mxu1 %v3399_v2 }
 0x177   :  { %1951 = vmatprep.subr.bf16.mxu1 %v3402_v3 }
 0x219   :  { %v1100_v43 = vpop.f32.mrf.mxu1 }
 0x21a   :  { %v1101_v50 = vadd.f32 %v1100_v43, %v899_v45  ;;  %v3492_v43 = vld [vmem:[%s4923_s8 + $0x84] ss:$8 sps:$4 sm:$0xff]  }
 0x21b   :  { %v1102_v46 = vpop.f32.mrf.mxu1 }
 0x21c   :  { %v1103_v48 = vadd.f32 %v1102_v46, %v903_v44  ;;  %v1119_v57 = vmax.f32 %v1101_v50, 0.0  ;;  %v4469_v46 = vld [vmem:[%s4924_s1 + $0x10] sm:$0xff]  ;;  %v3505_v50 = vld [vmem:[%s4923_s8 + $0x264] ss:$8 sps:$4 sm:$0xff]  }
 0x21d   :  { %v1104_v47 = vpop.f32.mrf.mxu1 }
 0x21e   :  { %v1105_v49 = vadd.f32 %v1104_v47, %v899_v45  ;;  %v1120_v55 = vmax.f32 %v1103_v48, 0.0  ;;  %v2953_v47 = vcombine.low %v4378_v9, %v4378_v9  ;;  %v3498_v48 = vld [vmem:[%s4923_s8 + $0x270] ss:$8 sps:$4 sm:$0xff]   ;;  %v3538_v9 = vld [vmem:[%s4923_s8 + $0x2b4] ss:$8 sps:$4 sm:$0xff]  }
 0x21f   :  { %v1106_v51 = vpop.f32.mrf.mxu1 }
 0x220   :  { %v1107_v52 = vadd.f32 %v1106_v51, %v903_v44  ;;  %v1121_v53 = vmax.f32 %v1105_v49, 0.0  ;;  %v2958_v49 = vcombine.high %v4469_v46, %v4469_v46  ;;  %v3503_v51 = vld [vmem:[%s4923_s8 + $0x260] ss:$8 sps:$4 sm:$0xff]  }
 0x221   :  { %v1110_v54 = vpop.f32.mrf.mxu1 }
 0x222   :  { %v1122_v56 = vmax.f32 %v1107_v52, 0.0  ;;  %v1127_v61 = vpack.c.bf16 %v1121_v53, %v1119_v57  ;;  %v1111_v2 = vadd.f32 %v1110_v54, %v899_v45  ;;  %v3508_v52 = vld [vmem:[%s4923_s8 + $0x254] ss:$8 sps:$4 sm:$0xff]   ;;  %v3506_v53 = vld [vmem:[%s4923_s8 + $0x250] ss:$8 sps:$4 sm:$0xff]  }
 0x223   :  { %v1112_v58 = vpop.f32.mrf.mxu1  ;;  %v3511_v54 = vld [vmem:[%s4923_s8 + $0x244] ss:$8 sps:$4 sm:$0xff]   ;;  %v3512_v57 = vld [vmem:[%s4923_s8 + $0x230] ss:$8 sps:$4 sm:$0xff]  }
 0x224   :  { %v1128_v59 = vpack.c.bf16 %v1122_v56, %v1120_v55  ;;  %v1113_v0 = vadd.f32 %v1112_v58, %v903_v44  ;;  %v1123_v13 = vmax.f32 %v1111_v2, 0.0  ;;  %v3509_v55 = vld [vmem:[%s4923_s8 + $0x240] ss:$8 sps:$4 sm:$0xff]   ;;  %v3514_v56 = vld [vmem:[%s4923_s8 + $0x234] ss:$8 sps:$4 sm:$0xff]  }
 0x225   :  { %v1114_v62 = vpop.f32.mrf.mxu1  ;;  %v3517_v58 = vld [vmem:[%s4923_s8 + $0x224] ss:$8 sps:$4 sm:$0xff]  }
 0x226   :  { %v1115_v1 = vadd.f32 %v1114_v62, %v899_v45  ;;  %1298 = vmatprep.mubr.bf16.mxu1 %v1128_v59  ;;  %v1124_v10 = vmax.f32 %v1113_v0, 0.0  ;;  %v3500_v45 = vld [vmem:[%s4923_s8 + $0x274] ss:$8 sps:$4 sm:$0xff]   ;;  %v3515_v59 = vld [vmem:[%s4923_s8 + $0x220] ss:$8 sps:$4 sm:$0xff]  }
 0x227   :  { %v1116_v3 = vpop.f32.mrf.mxu1  ;;  %1299 = vmatmul.mubr.bf16.vlgmr.msra.gmra.mxu1 %v1127_v61  ;;  %v3518_v61 = vld [vmem:[%s4923_s8 + $0x210] ss:$8 sps:$4 sm:$0xff]   ;;  %v3523_v62 = vld [vmem:[%s4923_s8 + $0x204] ss:$8 sps:$4 sm:$0xff]   ;;  %v3526_v0 = vld [vmem:[%s4923_s8 + $0x2f4] ss:$8 sps:$4 sm:$0xff]  }
 0x228   :  { %v1117_v4 = vadd.f32 %v1116_v3, %v903_v44  ;;  %1952 = vmatpush1.bf16.msra.mxu1 %v3400_v60  ;;  %v1125_v6 = vmax.f32 %v1115_v1, 0.0  ;;  %v3490_v44 = vld [vmem:[%s4923_s8 + $0x80] ss:$8 sps:$4 sm:$0xff]   ;;  %v3520_v60 = vld [vmem:[%s4923_s8 + $0x214] ss:$8 sps:$4 sm:$0xff]  }
 0x229   :  { %1953 = vmatprep.subr.bf16.mxu1 %v3408_v63  ;;  %v3521_v63 = vld [vmem:[%s4923_s8 + $0x200] ss:$8 sps:$4 sm:$0xff]   ;;  %v3524_v1 = vld [vmem:[%s4923_s8 + $0x2f0] ss:$8 sps:$4 sm:$0xff]   ;;  %v3529_v2 = vld [vmem:[%s4923_s8 + $0x2e4] ss:$8 sps:$4 sm:$0xff]  }
 0x22a   :  { %v1126_v11 = vmax.f32 %v1117_v4, 0.0  ;;  %v1129_v18 = vpack.c.bf16 %v1125_v6, %v1123_v13  ;;  %v3527_v3 = vld [vmem:[%s4923_s8 + $0x2e0] ss:$8 sps:$4 sm:$0xff]   ;;  %v3532_v4 = vld [vmem:[%s4923_s8 + $0x2d4] ss:$8 sps:$4 sm:$0xff]  }
 0x22b   :  { %v3535_v6 = vld [vmem:[%s4923_s8 + $0x2c4] ss:$8 sps:$4 sm:$0xff]   ;;  %v3539_v13 = vld [vmem:[%s4923_s8 + $0x2a0] ss:$8 sps:$4 sm:$0xff]  }
 0x22c   :  { %v1130_v15 = vpack.c.bf16 %v1126_v11, %v1124_v10  ;;  %1954 = vmatpush1.bf16.msra.mxu1 %v3406_v5  ;;  %v3530_v5 = vld [vmem:[%s4923_s8 + $0x2d0] ss:$8 sps:$4 sm:$0xff]   ;;  %v3541_v11 = vld [vmem:[%s4923_s8 + $0x2a4] ss:$8 sps:$4 sm:$0xff]  }
 0x22d   :  { %1955 = vmatprep.subr.bf16.mxu1 %v3414_v8  ;;  %v3533_v8 = vld [vmem:[%s4923_s8 + $0x2c0] ss:$8 sps:$4 sm:$0xff]   ;;  %v3536_v10 = vld [vmem:[%s4923_s8 + $0x2b0] ss:$8 sps:$4 sm:$0xff]  }
 0x22e   :  { %1306 = vmatprep.mubr.bf16.mxu1 %v1130_v15  ;;  %v3544_v15 = vld [vmem:[%s4923_s8 + $0x294] ss:$8 sps:$4 sm:$0xff]  }
 0x22f   :  { %1307 = vmatmul.mubr.bf16.gmra.mxu1 %v1129_v18  ;;  %v3545_v18 = vld [vmem:[%s4923_s8 + $0x280] ss:$8 sps:$4 sm:$0xff]  }
 0x230   :  { %1956 = vmatpush1.bf16.msra.mxu1 %v3412_v16  ;;  %1983 = vmatprep.mubr.bf16.mxu1 %v2954_v17  ;;  %v3542_v16 = vld [vmem:[%s4923_s8 + $0x290] ss:$8 sps:$4 sm:$0xff]   ;;  %v3547_v17 = vld [vmem:[%s4923_s8 + $0x284] ss:$8 sps:$4 sm:$0xff]  }
 0x231   :  { %1957 = vmatprep.subr.bf16.mxu1 %v3420_v19  ;;  %v2957_v19 = vcombine.low %v4469_v46, %v4469_v46  ;;  %v3585_v46 = vld [vmem:[%s4926_s10 + $0xc4] ss:$8 sps:$4 sm:$0xff]  }
 0x234   :  { %1958 = vmatpush1.bf16.msra.mxu1 %v3418_v20  ;;  %v4570_v20 = vpop.f32.mrf.mxu0 }
 0x235   :  { %1959 = vmatprep.subr.bf16.mxu1 %v3426_v21 }
 0x236   :  { %v4572_v21 = vpop.f32.mrf.mxu0 }
 0x238   :  { %1960 = vmatpush1.bf16.msra.mxu1 %v3424_v22  ;;  %v3550_v22 = vld [vmem:[%s4926_s10 + $0x70] ss:$8 sps:$4 sm:$0xff]  }
 0x239   :  { %1961 = vmatprep.subr.bf16.mxu1 %v3432_v23  ;;  %v2030_v23 = vpop.f32.mrf.mxu0 }
 0x23a   :  { %v3626_v23 = vld [vmem:[%s4929_s12 + $0x68] sm:$0xff]  }
 0x23c   :  { %1962 = vmatpush1.bf16.msra.mxu1 %v3430_v24  ;;  %v3552_v24 = vld [vmem:[%s4926_s10 + $0x74] ss:$8 sps:$4 sm:$0xff]  }
 0x23d   :  { %1963 = vmatprep.subr.bf16.mxu1 %v3438_v25  ;;  %v3555_v25 = vld [vmem:[%s4926_s10 + $0x64] ss:$8 sps:$4 sm:$0xff]   ;;  %2280 = vmatprep.subr.bf16.mxu0 %v3552_v24 }
 0x23e   :  { %2281 = vmatpush1.bf16.msra.mxu0 %v3550_v22  ;;  %v3625_v22 = vld [vmem:[%s4929_s12 + $0x30] sm:$0xff]   ;;  %v3627_v24 = vld [vmem:[%s4929_s12 + $0x28] sm:$0xff]  }
 0x23f   :  { %2282 = vmatprep.subr.bf16.mxu0 %v3555_v25  ;;  %v3628_v25 = vld [vmem:[%s4929_s12 + $0x60] sm:$0xff]  }
 0x240   :  { %1964 = vmatpush1.bf16.msra.mxu1 %v3436_v26  ;;  %v2031_v26 = vpop.f32.mrf.mxu0 }
 0x241   :  { %1965 = vmatprep.subr.bf16.mxu1 %v3444_v27  ;;  %v3553_v27 = vld [vmem:[%s4926_s10 + $0x60] ss:$8 sps:$4 sm:$0xff]  }
 0x242   :  { %2283 = vmatpush1.bf16.msra.mxu0 %v3553_v27  ;;  %v3629_v26 = vld [vmem:[%s4929_s12 + $0x20] sm:$0xff]  }
 0x244   :  { %1966 = vmatpush1.bf16.msra.mxu1 %v3442_v28  ;;  %v3558_v28 = vld [vmem:[%s4926_s10 + $0x54] ss:$8 sps:$4 sm:$0xff]  }
 0x245   :  { %1967 = vmatprep.subr.bf16.mxu1 %v3450_v29  ;;  %v3556_v29 = vld [vmem:[%s4926_s10 + $0x50] ss:$8 sps:$4 sm:$0xff]   ;;  %2284 = vmatprep.subr.bf16.mxu0 %v3558_v28 }
 0x246   :  { %2285 = vmatpush1.bf16.msra.mxu0 %v3556_v29  ;;  %v3630_v28 = vld [vmem:[%s4929_s12 + $0x58] sm:$0xff]  }
 0x248   :  { %1968 = vmatpush2.bf16.msra.mxu1 %v3448_v30  ;;  %v3561_v30 = vld [vmem:[%s4926_s10 + $0x44] ss:$8 sps:$4 sm:$0xff]  }
 0x249   :  { %1969 = vmatprep.subr.bf16.mxu1 %v3456_v31  ;;  %v3559_v31 = vld [vmem:[%s4926_s10 + $0x40] ss:$8 sps:$4 sm:$0xff]   ;;  %2286 = vmatprep.subr.bf16.mxu0 %v3561_v30  ;;  %v3631_v30 = vld [vmem:[%s4929_s12 + $0x18] sm:$0xff]  }
 0x24a   :  { %2287 = vmatpush1.bf16.msra.mxu0 %v3559_v31 }
 0x24c   :  { %1970 = vmatpush2.bf16.msra.mxu1 %v3454_v32  ;;  %v3564_v32 = vld [vmem:[%s4926_s10 + $0x34] ss:$8 sps:$4 sm:$0xff]  }
 0x24d   :  { %1971 = vmatprep.subr.bf16.mxu1 %v3462_v33  ;;  %v3562_v33 = vld [vmem:[%s4926_s10 + $0x30] ss:$8 sps:$4 sm:$0xff]   ;;  %2288 = vmatprep.subr.bf16.mxu0 %v3564_v32 }
 0x24e   :  { %2289 = vmatpush1.bf16.msra.mxu0 %v3562_v33  ;;  %v3632_v32 = vld [vmem:[%s4929_s12 + $0x50] sm:$0xff]  }
 0x250   :  { %1972 = vmatpush2.bf16.msra.mxu1 %v3460_v34  ;;  %v3567_v34 = vld [vmem:[%s4926_s10 + $0x24] ss:$8 sps:$4 sm:$0xff]  }
 0x251   :  { %1973 = vmatprep.subr.bf16.mxu1 %v3468_v35  ;;  %v3565_v35 = vld [vmem:[%s4926_s10 + $0x20] ss:$8 sps:$4 sm:$0xff]   ;;  %2290 = vmatprep.subr.bf16.mxu0 %v3567_v34  ;;  %v3633_v34 = vld [vmem:[%s4929_s12 + $0x10] sm:$0xff]  }
 0x252   :  { %2291 = vmatpush1.bf16.msra.mxu0 %v3565_v35  ;;  %v1438_v35 = vld [vmem:[%s4930_s9] sm:$0x3] }
 0x254   :  { %1974 = vmatpush2.bf16.msra.mxu1 %v3466_v36  ;;  %v3570_v36 = vld [vmem:[%s4926_s10 + $0x14] ss:$8 sps:$4 sm:$0xff]  }
 0x255   :  { %1975 = vmatprep.subr.bf16.mxu1 %v3474_v37  ;;  %v3568_v37 = vld [vmem:[%s4926_s10 + $0x10] ss:$8 sps:$4 sm:$0xff]   ;;  %2292 = vmatprep.subr.bf16.mxu0 %v3570_v36  ;;  %v1443_v36 = vrot.slane %v1438_v35, %v4197_v14 }
 0x256   :  { %2293 = vmatpush1.bf16.msra.mxu0 %v3568_v37  ;;  %v1447_v37 = vrot.slane %v1438_v35, %v4192_v12 }
 0x258   :  { %1976 = vmatpush2.bf16.msra.mxu1 %v3472_v38  ;;  %v3573_v38 = vld [vmem:[%s4926_s10 + $0x4] ss:$8 sps:$4 sm:$0xff]  }
 0x259   :  { %1977 = vmatprep.subr.bf16.mxu1 %v3480_v39  ;;  %v3571_v39 = vld [vmem:[%s4926_s10] ss:$8 sps:$4 sm:$0xff]   ;;  %2294 = vmatprep.subr.bf16.mxu0 %v3573_v38 }
 0x25a   :  { %2295 = vmatpush1.bf16.msra.mxu0 %v3571_v39 }
 0x25c   :  { %1978 = vmatpush2.bf16.msra.mxu1 %v3478_v40  ;;  %v3576_v40 = vld [vmem:[%s4926_s10 + $0xf4] ss:$8 sps:$4 sm:$0xff]  }
 0x25d   :  { %1979 = vmatprep.subr.bf16.mxu1 %v3486_v41  ;;  %v3574_v41 = vld [vmem:[%s4926_s10 + $0xf0] ss:$8 sps:$4 sm:$0xff]   ;;  %2296 = vmatprep.subr.bf16.mxu0 %v3576_v40 }
 0x25e   :  { %2297 = vmatpush2.bf16.msra.mxu0 %v3574_v41 }
 0x260   :  { %1980 = vmatpush2.bf16.msra.mxu1 %v3484_v42  ;;  %v3579_v42 = vld [vmem:[%s4926_s10 + $0xe4] ss:$8 sps:$4 sm:$0xff]  }
 0x261   :  { %1981 = vmatprep.subr.bf16.mxu1 %v3492_v43  ;;  %v3577_v43 = vld [vmem:[%s4926_s10 + $0xe0] ss:$8 sps:$4 sm:$0xff]   ;;  %2298 = vmatprep.subr.bf16.mxu0 %v3579_v42 }
 0x262   :  { %2299 = vmatpush2.bf16.msra.mxu0 %v3577_v43 }
 0x264   :  { %1982 = vmatpush2.bf16.msra.mxu1 %v3490_v44  ;;  %v3582_v44 = vld [vmem:[%s4926_s10 + $0xd4] ss:$8 sps:$4 sm:$0xff]  }
 0x265   :  { %2033 = vmatprep.subr.bf16.mxu1 %v3500_v45  ;;  %v3580_v45 = vld [vmem:[%s4926_s10 + $0xd0] ss:$8 sps:$4 sm:$0xff]   ;;  %2300 = vmatprep.subr.bf16.mxu0 %v3582_v44 }
 0x266   :  { %2301 = vmatpush2.bf16.msra.mxu0 %v3580_v45 }
 0x267   :  { %1984 = vmatmul.mubr.bf16.vlgmr.msra.gmra.mxu1 %v2953_v47  ;;  %v3583_v47 = vld [vmem:[%s4926_s10 + $0xc0] ss:$8 sps:$4 sm:$0xff]   ;;  %2302 = vmatprep.subr.bf16.mxu0 %v3585_v46 }
 0x268   :  { %2034 = vmatpush1.bf16.msra.mxu1 %v3498_v48  ;;  %2065 = vmatprep.mubr.bf16.mxu1 %v2958_v49  ;;  %v3588_v48 = vld [vmem:[%s4926_s10 + $0xb4] ss:$8 sps:$4 sm:$0xff]   ;;  %v3586_v49 = vld [vmem:[%s4926_s10 + $0xb0] ss:$8 sps:$4 sm:$0xff]  }
 0x269   :  { %2035 = vmatprep.subr.bf16.mxu1 %v3505_v50  ;;  %v3591_v50 = vld [vmem:[%s4926_s10 + $0xa4] ss:$8 sps:$4 sm:$0xff]  }
 0x26a   :  { %2303 = vmatpush2.bf16.msra.mxu0 %v3583_v47 }
 0x26b   :  { %2304 = vmatprep.subr.bf16.mxu0 %v3588_v48  ;;  %v3598_v48 = vld [vmem:[%s4928_s16 + $0x70] ss:$8 sps:$4 sm:$0xff]  }
 0x26c   :  { %2036 = vmatpush1.bf16.msra.mxu1 %v3503_v51  ;;  %v3589_v51 = vld [vmem:[%s4926_s10 + $0xa0] ss:$8 sps:$4 sm:$0xff]  }
 0x26d   :  { %2037 = vmatprep.subr.bf16.mxu1 %v3508_v52  ;;  %v3594_v52 = vld [vmem:[%s4926_s10 + $0x94] ss:$8 sps:$4 sm:$0xff]  }
 0x26e   :  { %2305 = vmatpush2.bf16.msra.mxu0 %v3586_v49 }
 0x26f   :  { %2306 = vmatprep.subr.bf16.mxu0 %v3591_v50 }
 0x270   :  { %2038 = vmatpush1.bf16.msra.mxu1 %v3506_v53  ;;  %v3592_v53 = vld [vmem:[%s4926_s10 + $0x90] ss:$8 sps:$4 sm:$0xff]  }
 0x271   :  { %2039 = vmatprep.subr.bf16.mxu1 %v3511_v54 }
 0x272   :  { %2307 = vmatpush2.bf16.msra.mxu0 %v3589_v51  ;;  %v3603_v51 = vld [vmem:[%s4928_s16 + $0x64] ss:$8 sps:$4 sm:$0xff]  }
 0x273   :  { %2308 = vmatprep.subr.bf16.mxu0 %v3594_v52  ;;  %v3606_v52 = vld [vmem:[%s4928_s16 + $0x54] ss:$8 sps:$4 sm:$0xff]  }
 0x274   :  { %2040 = vmatpush1.bf16.msra.mxu1 %v3509_v55 }
 0x275   :  { %2041 = vmatprep.subr.bf16.mxu1 %v3514_v56  ;;  %v2936_v56 = vld [vmem:[%s4927_s7] ss:$0 sm:$0xff] }
 0x276   :  { %2309 = vmatpush2.bf16.msra.mxu0 %v3592_v53  ;;  %v3604_v53 = vld [vmem:[%s4928_s16 + $0x50] ss:$8 sps:$4 sm:$0xff]  }
 0x278   :  { %2042 = vmatpush1.bf16.msra.mxu1 %v3512_v57  ;;  %v3597_v57 = vld [vmem:[%s4926_s10 + $0x84] ss:$8 sps:$4 sm:$0xff]  }
 0x279   :  { %2043 = vmatprep.subr.bf16.mxu1 %v3517_v58  ;;  %2310 = vmatprep.subr.bf16.mxu0 %v3597_v57  ;;  %v3612_v57 = vld [vmem:[%s4928_s16 + $0x34] ss:$8 sps:$4 sm:$0xff]  }
 0x27c   :  { %2044 = vmatpush1.bf16.msra.mxu1 %v3515_v59  ;;  %v3595_v59 = vld [vmem:[%s4926_s10 + $0x80] ss:$8 sps:$4 sm:$0xff]  }
 0x27d   :  { %2045 = vmatprep.subr.bf16.mxu1 %v3520_v60  ;;  %2311 = vmatpush2.bf16.msra.mxu0 %v3595_v59  ;;  %v3610_v59 = vld [vmem:[%s4928_s16 + $0x30] ss:$8 sps:$4 sm:$0xff]  }
 0x280   :  { %2046 = vmatpush1.bf16.msra.mxu1 %v3518_v61 }
 0x281   :  { %2047 = vmatprep.subr.bf16.mxu1 %v3523_v62 }
 0x284   :  { %2048 = vmatpush1.bf16.msra.mxu1 %v3521_v63 }
 0x285   :  { %2049 = vmatprep.subr.bf16.mxu1 %v3526_v0 }
 0x288   :  { %2050 = vmatpush2.bf16.msra.mxu1 %v3524_v1 }
 0x289   :  { %2051 = vmatprep.subr.bf16.mxu1 %v3529_v2 }
 0x28c   :  { %2052 = vmatpush2.bf16.msra.mxu1 %v3527_v3 }
 0x28d   :  { %2053 = vmatprep.subr.bf16.mxu1 %v3532_v4  ;;  %v3600_v4 = vld [vmem:[%s4928_s16 + $0x74] ss:$8 sps:$4 sm:$0xff]  }
 0x28e   :  { %2621 = vmatprep.subr.bf16.mxu0 %v3600_v4 }
 0x290   :  { %2054 = vmatpush2.bf16.msra.mxu1 %v3530_v5 }
 0x291   :  { %2055 = vmatprep.subr.bf16.mxu1 %v3535_v6 }
 0x294   :  { %2056 = vmatpush2.bf16.msra.mxu1 %v3533_v8 }
 0x295   :  { %2057 = vmatprep.subr.bf16.mxu1 %v3538_v9 }
 0x298   :  { %2058 = vmatpush2.bf16.msra.mxu1 %v3536_v10 }
 0x299   :  { %2059 = vmatprep.subr.bf16.mxu1 %v3541_v11 }
 0x29c   :  { %2060 = vmatpush2.bf16.msra.mxu1 %v3539_v13 }
 0x29d   :  { %2061 = vmatprep.subr.bf16.mxu1 %v3544_v15 }
 0x2a0   :  { %2062 = vmatpush2.bf16.msra.mxu1 %v3542_v16 }
 0x2a1   :  { %2063 = vmatprep.subr.bf16.mxu1 %v3547_v17  ;;  %v3622_v17 = vld [vmem:[%s4929_s12 + $0x78] sm:$0xff]  }
 0x2a4   :  { %2064 = vmatpush2.bf16.msra.mxu1 %v3545_v18  ;;  %v3623_v18 = vld [vmem:[%s4929_s12 + $0x38] sm:$0xff]  }
 0x2a5   :  { %3160 = vmatprep.subr.bf16.mxu1 %v3622_v17 }
 0x2a7   :  { %2066 = vmatmul.mubr.bf16.vlgmr.msra.gmra.mxu1 %v2957_v19  ;;  %v3624_v19 = vld [vmem:[%s4929_s12 + $0x70] sm:$0xff]  }
 0x2a8   :  { %3161 = vmatpush3.bf16.msra.mxu1 %v3623_v18 }
 0x2a9   :  { %3162 = vmatprep.subr.bf16.mxu1 %v3624_v19 }
 0x2ac   :  { %3163 = vmatpush3.bf16.msra.mxu1 %v3625_v22 }
 0x2ad   :  { %3164 = vmatprep.subr.bf16.mxu1 %v3626_v23 }
 0x2b0   :  { %3165 = vmatpush3.bf16.msra.mxu1 %v3627_v24 }
 0x2b1   :  { %3166 = vmatprep.subr.bf16.mxu1 %v3628_v25 }
 0x2b4   :  { %3167 = vmatpush3.bf16.msra.mxu1 %v3629_v26  ;;  %v3635_v26 = vld [vmem:[%s4929_s12 + $0x8] sm:$0xff]  }
 0x2b5   :  { %3168 = vmatprep.subr.bf16.mxu1 %v3630_v28 }
 0x2b8   :  { %3169 = vmatpush3.bf16.msra.mxu1 %v3631_v30 }
 0x2b9   :  { %3170 = vmatprep.subr.bf16.mxu1 %v3632_v32 }
 0x2bc   :  { %3171 = vmatpush3.bf16.msra.mxu1 %v3633_v34 }
 0x2e7   :  { %v3148_v54 = vpop.f32.mrf.mxu1 }
 0x2e9   :  { %v3149_v55 = vpop.f32.mrf.mxu1 }
 0x2ea   :  { %v3150_v58 = vadd.f32 %v3149_v55, %v3148_v54  ;;  %v3609_v54 = vld [vmem:[%s4928_s16 + $0x44] ss:$8 sps:$4 sm:$0xff]   ;;  %v3607_v55 = vld [vmem:[%s4928_s16 + $0x40] ss:$8 sps:$4 sm:$0xff]  }
 0x2eb   :  { %v3151_v60 = vpop.f32.mrf.mxu1 }
 0x2ec   :  { %v4673_v61 = vadd.f32 %v3150_v58, %v2936_v56 }
 0x2ed   :  { %v3152_v62 = vpop.f32.mrf.mxu1 }
 0x2ee   :  { %v3153_v63 = vadd.f32 %v3152_v62, %v3151_v60  ;;  %v1315_v0 = vmul.f32 %v4673_v61, %v4673_v61  ;;  %v3615_v62 = vld [vmem:[%s4928_s16 + $0x24] ss:$8 sps:$4 sm:$0xff]  }
 0x2ef   :  { %v3154_v1 = vpop.f32.mrf.mxu1 }
 0x2f0   :  { %v4677_v2 = vadd.f32 %v3153_v63, %v2936_v56  ;;  %1319 = vadd.xlane.f32.xlu0 %v1315_v0  ;;  %v3613_v0 = vld [vmem:[%s4928_s16 + $0x20] ss:$8 sps:$4 sm:$0xff]  }
 0x2f1   :  { %v3155_v3 = vpop.f32.mrf.mxu1 }
 0x2f2   :  { %v3156_v5 = vadd.f32 %v3155_v3, %v3154_v1  ;;  %v1316_v6 = vmul.f32 %v4677_v2, %v4677_v2  ;;  %v3618_v3 = vld [vmem:[%s4928_s16 + $0x14] ss:$8 sps:$4 sm:$0xff]  }
 0x2f3   :  { %v3157_v8 = vpop.f32.mrf.mxu1 }
 0x2f4   :  { %1321 = vadd.xlane.f32.xlu0 %v1316_v6  ;;  %v4684_v9 = vadd.f32 %v3156_v5, %v2936_v56  ;;  %v3616_v5 = vld [vmem:[%s4928_s16 + $0x10] ss:$8 sps:$4 sm:$0xff]  }
 0x2f5   :  { %v3158_v10 = vpop.f32.mrf.mxu1 }
 0x2f6   :  { %v3159_v11 = vadd.f32 %v3158_v10, %v3157_v8  ;;  %v1317_v13 = vmul.f32 %v4684_v9, %v4684_v9  ;;  %v3621_v8 = vld [vmem:[%s4928_s16 + $0x4] ss:$8 sps:$4 sm:$0xff]  }
 0x2f8   :  { %v4688_v15 = vadd.f32 %v3159_v11, %v2936_v56  ;;  %1323 = vadd.xlane.f32.xlu1 %v1317_v13  ;;  %v3619_v11 = vld [vmem:[%s4928_s16] ss:$8 sps:$4 sm:$0xff]  }
 0x2fa   :  { %v1318_v16 = vmul.f32 %v4688_v15, %v4688_v15 }
 0x2fc   :  { %1325 = vadd.xlane.f32.xlu1 %v1318_v16 }
 0x327   :  { %v1985_v27 = vpop.f32.mrf.mxu1 }
 0x328   :  { %v1986_v38 = vadd.f32 %v1985_v27, %v1443_v36  ;;  %v2108_v27 = vld [vmem:[%s4931_s11] sm:$0x3] }
 0x329   :  { %v1987_v29 = vpop.f32.mrf.mxu1  ;;  %v2113_v28 = vrot.slane %v2108_v27, %v4197_v14 }
 0x32a   :  { %v1988_v39 = vadd.f32 %v1987_v29, %v1447_v37  ;;  %v2027_v40 = vadd.f32 %v4570_v20, %v1986_v38  ;;  %v3601_v20 = vld [vmem:[%s4928_s16 + $0x60] ss:$8 sps:$4 sm:$0xff]   ;;  %v2117_v29 = vrot.slane %v2108_v27, %v4192_v12 }
 0x32b   :  { %v1989_v31 = vpop.f32.mrf.mxu1 }
 0x32c   :  { %v2029_v42 = vadd.f32 %v4572_v21, %v1988_v39  ;;  %v3680_v21 = vmov 0  }
 0x32d   :  { %v1990_v33 = vpop.f32.mrf.mxu1 }
 0x367   :  { %v2067_v41 = vpop.f32.mrf.mxu1 }
 0x368   :  { %v2068_v43 = vadd.f32 %v2067_v41, %v2027_v40 }
 0x369   :  { %v2069_v44 = vpop.f32.mrf.mxu1 }
 0x36a   :  { %v2070_v45 = vadd.f32 %v2069_v44, %v2029_v42  ;;  %v2074_v49 = vpack.c.bf16 %v2068_v43, %v2068_v43 }
 0x36b   :  { %v2071_v46 = vpop.f32.mrf.mxu1 }
 0x36c   :  { %v2075_v47 = vpack.c.bf16 %v2070_v45, %v2070_v45 }
 0x36d   :  { %v2072_v50 = vpop.f32.mrf.mxu1 }
 0x36e   :  { %2312 = vmatprep.mubr.bf16.mxu0 %v2075_v47 }
 0x36f   :  { %2313 = vmatmul.mubr.bf16.vlgmr.msra.gmra.mxu0 %v2074_v49 }
 0x370   :  { %2622 = vmatpush1.bf16.msra.mxu0 %v3598_v48  ;;  %2653 = vmatprep.mubr.bf16.mxu0 %v3680_v21 }
 0x371   :  { %2623 = vmatprep.subr.bf16.mxu0 %v3603_v51 }
 0x374   :  { %2624 = vmatpush1.bf16.msra.mxu0 %v3601_v20 }
 0x375   :  { %2625 = vmatprep.subr.bf16.mxu0 %v3606_v52 }
 0x378   :  { %2626 = vmatpush1.bf16.msra.mxu0 %v3604_v53  ;;  %v3087_v53 = vld [vmem:[%s4933_s13] ss:$0 sm:$0xff] }
 0x379   :  { %v1320_v56 = vpop.xlane.xlu0 %1319  ;;  %2627 = vmatprep.subr.bf16.mxu0 %v3609_v54 }
 0x37a   :  { %v1327_v58 = vmax.f32 %v1320_v56, 1e-24 }
 0x37c   :  { %2628 = vmatpush1.bf16.msra.mxu0 %v3607_v55  ;;  %3638 = vrsqrt.f32 %v1327_v58 }
 0x37d   :  { %v1322_v60 = vpop.xlane.xlu0 %1321  ;;  %2629 = vmatprep.subr.bf16.mxu0 %v3612_v57 }
 0x37e   :  { %v1328_v63 = vmax.f32 %v1322_v60, 1e-24 }
 0x380   :  { %3640 = vrsqrt.f32 %v1328_v63  ;;  %2630 = vmatpush1.bf16.msra.mxu0 %v3610_v59 }
 0x381   :  { %v1324_v1 = vpop.xlane.xlu1 %1323  ;;  %2631 = vmatprep.subr.bf16.mxu0 %v3615_v62 }
 0x382   :  { %v1329_v4 = vmax.f32 %v1324_v1, 1e-24 }
 0x384   :  { %2632 = vmatpush1.bf16.msra.mxu0 %v3613_v0  ;;  %3642 = vrsqrt.f32 %v1329_v4 }
 0x385   :  { %v1326_v6 = vpop.xlane.xlu1 %1325  ;;  %2633 = vmatprep.subr.bf16.mxu0 %v3618_v3 }
 0x386   :  { %v1330_v10 = vmax.f32 %v1326_v6, 1e-24 }
 0x388   :  { %3644 = vrsqrt.f32 %v1330_v10  ;;  %2634 = vmatpush1.bf16.msra.mxu0 %v3616_v5 }
 0x389   :  { %2635 = vmatprep.subr.bf16.mxu0 %v3621_v8  ;;  %v3639_v13 = vpop.eup %3638 }
 0x38a   :  { %v4781_v17 = vmul.f32 %v3639_v13, %v4673_v61 }
 0x38c   :  { %2636 = vmatpush1.bf16.msra.mxu0 %v3619_v11 }
 0x38d   :  { %v3641_v16 = vpop.eup %3640 }
 0x38e   :  { %v4784_v18 = vmul.f32 %v3641_v16, %v4677_v2  ;;  %v3634_v2 = vld [vmem:[%s4929_s12 + $0x48] sm:$0xff]  }
 0x38f   :  { %3172 = vmatprep.subr.bf16.mxu1 %v3634_v2 }
 0x390   :  { %v2523_v19 = vpack.c.bf16 %v4784_v18, %v4781_v17  ;;  %3173 = vmatpush3.bf16.msra.mxu1 %v3635_v26 }
 0x391   :  { %v3643_v22 = vpop.eup %3642 }
 0x392   :  { %2654 = vmatmul.mubr.bf16.vlgmr.msra.gmra.mxu0 %v2523_v19  ;;  %v4789_v24 = vmul.f32 %v3643_v22, %v4684_v9  ;;  %v3636_v9 = vld [vmem:[%s4929_s12 + $0x40] sm:$0xff]  }
 0x393   :  { %2663 = vmatprep.mubr.bf16.mxu0 %v3680_v21  ;;  %3174 = vmatprep.subr.bf16.mxu1 %v3636_v9 }
 0x395   :  { %v3645_v23 = vpop.eup %3644 }
 0x396   :  { %v4792_v25 = vmul.f32 %v3645_v23, %v4688_v15  ;;  %v3637_v15 = vld [vmem:[%s4929_s12] sm:$0xff]  }
 0x397   :  { %3175 = vmatpush3.bf16.msra.mxu1 %v3637_v15 }
 0x398   :  { %v2524_v61 = vpack.c.bf16 %v4792_v25, %v4789_v24 }
 0x39a   :  { %2664 = vmatmul.mubr.bf16.gmra.mxu0 %v2524_v61 }
 0x42f   :  { %v2314_v30 = vpop.f32.mrf.mxu0 }
 0x430   :  { %v2315_v31 = vadd.f32 %v2314_v30, %v2113_v28 }
 0x431   :  { %v2316_v32 = vpop.f32.mrf.mxu0 }
 0x432   :  { %v2317_v33 = vadd.f32 %v2316_v32, %v2117_v29  ;;  %v2321_v34 = vmax.f32 %v2315_v31, 0.0 }
 0x433   :  { %v2318_v35 = vpop.f32.mrf.mxu0 }
 0x434   :  { %v2322_v36 = vmax.f32 %v2317_v33, 0.0  ;;  %v2323_v39 = vpack.c.bf16 %v2321_v34, %v2321_v34 }
 0x435   :  { %v2319_v37 = vpop.f32.mrf.mxu0 }
 0x436   :  { %v2324_v38 = vpack.c.bf16 %v2322_v36, %v2322_v36 }
 0x438   :  { %2492 = vmatprep.mubr.bf16.mxu1 %v2324_v38 }
 0x439   :  { %2493 = vmatmul.mubr.bf16.vlgmr.msra.gmra.mxu1 %v2323_v39 }
 0x452   :  { %v2655_v40 = vpop.f32.mrf.mxu0 }
 0x453   :  { %v2674_v41 = vmul.f32 14.285714, %v2655_v40 }
 0x454   :  { %v2657_v42 = vpop.f32.mrf.mxu0 }
 0x455   :  { %2682 = vst [vmem:[%s4932_s18] sm:$0xff] %v2674_v41  ;;  %v2675_v12 = vmul.f32 14.285714, %v2657_v42  ;;  %v3124_v1 = vadd.f32 -14.285714, %v2674_v41 }
 0x456   :  { %v2659_v14 = vpop.f32.mrf.mxu0 }
 0x457   :  { %2683 = vst [vmem:[%s4932_s18 + $0x8] sm:$0xff] %v2675_v12  ;;  %v2676_v43 = vmul.f32 14.285714, %v2659_v14  ;;  %v3125_v63 = vadd.f32 -14.285714, %v2675_v12 }
 0x458   :  { %v2661_v44 = vpop.f32.mrf.mxu0  ;;  %v2710_v10 = vmul.f32 1.442695, %v3124_v1 }
 0x459   :  { %2684 = vst [vmem:[%s4932_s18 + $0x10] sm:$0xff] %v2676_v43  ;;  %v2677_v45 = vmul.f32 14.285714, %v2661_v44  ;;  %v3126_v3 = vadd.f32 -14.285714, %v2676_v43 }
 0x45a   :  { %v2665_v46 = vpop.f32.mrf.mxu0  ;;  %v2712_v4 = vmul.f32 1.442695, %v3125_v63 }
 0x45b   :  { %2685 = vst [vmem:[%s4932_s18 + $0x18] sm:$0xff] %v2677_v45  ;;  %v2678_v47 = vmul.f32 14.285714, %v2665_v46  ;;  %v3127_v0 = vadd.f32 -14.285714, %v2677_v45 }
 0x45c   :  { %v2667_v48 = vpop.f32.mrf.mxu0  ;;  %v2714_v13 = vmul.f32 1.442695, %v3126_v3 }
 0x45d   :  { %2686 = vst [vmem:[%s4932_s18 + $0x20] sm:$0xff] %v2678_v47  ;;  %v2679_v49 = vmul.f32 14.285714, %v2667_v48  ;;  %v2716_v6 = vmul.f32 1.442695, %v3127_v0 }
 0x45e   :  { %v2669_v50 = vpop.f32.mrf.mxu0  ;;  %v3128_v11 = vadd.f32 -14.285714, %v2678_v47 }
 0x45f   :  { %2687 = vst [vmem:[%s4932_s18 + $0x28] sm:$0xff] %v2679_v49  ;;  %v2680_v51 = vmul.f32 14.285714, %v2669_v50  ;;  %v3129_v5 = vadd.f32 -14.285714, %v2679_v49 }
 0x460   :  { %v2671_v20 = vpop.f32.mrf.mxu0  ;;  %v2718_v23 = vmul.f32 1.442695, %v3128_v11 }
 0x461   :  { %2688 = vst [vmem:[%s4932_s18 + $0x30] sm:$0xff] %v2680_v51  ;;  %v2681_v21 = vmul.f32 14.285714, %v2671_v20  ;;  %v3130_v16 = vadd.f32 -14.285714, %v2680_v51 }
 0x462   :  { %v2720_v19 = vmul.f32 1.442695, %v3129_v5 }
 0x463   :  { %2689 = vst [vmem:[%s4932_s18 + $0x38] sm:$0xff] %v2681_v21  ;;  %v3131_v8 = vadd.f32 -14.285714, %v2681_v21  ;;  %v2722_v61 = vmul.f32 1.442695, %v3130_v16 }
 0x465   :  { %v2724_v22 = vmul.f32 1.442695, %v3131_v8 }
 0x4f9   :  { %v3176_v52 = vpop.f32.mrf.mxu1 }
 0x4fb   :  { %v3177_v54 = vpop.f32.mrf.mxu1 }
 0x4fc   :  { %v3178_v55 = vadd.f32 %v3177_v54, %v3176_v52 }
 0x4fd   :  { %v3179_v56 = vpop.f32.mrf.mxu1 }
 0x4fe   :  { %v2495_v57 = vadd.f32 %v3178_v55, %v3087_v53 }
 0x4ff   :  { %v3180_v58 = vpop.f32.mrf.mxu1 }
 0x500   :  { %v2500_v59 = vmul.f32 %v2495_v57, %v2495_v57 }
 0x502   :  { %2501 = vadd.xlane.f32.xlu0 %v2500_v59 }
 0x58b   :  { %v2502_v60 = vpop.xlane.xlu0 %2501 }
 0x58c   :  { %v2503_v62 = vmax.f32 %v2502_v60, 1e-24 }
 0x58e   :  { %3646 = vrsqrt.f32 %v2503_v62  ;;  %v2771_v62 = vand.u32 127, %v165_v7 }
 0x58f   :  { %3648 = vpow2.f32 %v2712_v4 }
 0x590   :  { %3650 = vpow2.f32 %v2716_v6  ;;  %vm2773_vm0 = vcmp.eq.s32.totalorder %v2771_v62, 1  ;;  %vm2772_vm1 = vcmp.eq.s32.totalorder %v2771_v62, 0 }
 0x591   :  { %3652 = vpow2.f32 %v2710_v10 }
 0x592   :  { %3654 = vpow2.f32 %v2714_v13 }
 0x593   :  { %3656 = vpow2.f32 %v2720_v19 }
 0x594   :  { %3658 = vpow2.f32 %v2724_v22 }
 0x595   :  { %3660 = vpow2.f32 %v2718_v23 }
 0x596   :  { %3662 = vpow2.f32 %v2722_v61 }
 0x59b   :  { %v3647_v2 = vpop.eup %3646 }
 0x59c   :  { %v2505_v26 = vmul.f32 %v3647_v2, %v2495_v57  ;;  %v4845_v27 = vpop.eup %3648 }
 0x59d   :  { %v3651_v30 = vpop.eup %3650 }
 0x59e   :  { %v2508_v9 = vmul.f32 %v2505_v26, %v4784_v18  ;;  %2506 = vst [vmem:[%s4934_s17] sm:$0xff] %v2505_v26  ;;  %v2507_v15 = vmul.f32 %v2505_v26, %v4781_v17  ;;  %v2510_v28 = vmul.f32 %v2505_v26, %v4792_v25  ;;  %v2509_v29 = vmul.f32 %v2505_v26, %v4789_v24  ;;  %v3653_v31 = vpop.eup %3652 }
 0x59f   :  { %v3655_v32 = vpop.eup %3654  ;;  %v2726_v34 = vadd.f32 %v3653_v31, %v4845_v27 }
 0x5a0   :  { %2513 = vadd.xlane.f32.xlu0 %v2508_v9  ;;  %2511 = vadd.xlane.f32.xlu1 %v2507_v15  ;;  %v4849_v18 = vpop.eup %3656  ;;  %v2729_v33 = vadd.f32 %v3655_v32, %v3651_v30 }
 0x5a1   :  { %v4852_v35 = vpop.eup %3658 }
 0x5a2   :  { %v4854_v17 = vpop.eup %3660 }
 0x5a3   :  { %v4856_v36 = vpop.eup %3662  ;;  %v2732_v25 = vadd.f32 %v4854_v17, %v4849_v18 }
 0x5a4   :  { %2517 = vadd.xlane.f32.xlu0 %v2510_v28  ;;  %2515 = vadd.xlane.f32.xlu1 %v2509_v29  ;;  %v2735_v24 = vadd.f32 %v4856_v36, %v4852_v35 }
 0x5a8   :  { %2730 = vadd.xlane.f32.xlu0 %v2729_v33  ;;  %2727 = vadd.xlane.f32.xlu1 %v2726_v34 }
 0x5ac   :  { %2736 = vadd.xlane.f32.xlu0 %v2735_v24  ;;  %2733 = vadd.xlane.f32.xlu1 %v2732_v25 }
 0x629   :  { %v2514_v37 = vpop.xlane.xlu0 %2513  ;;  %v2512_v38 = vpop.xlane.xlu1 %2511 }
 0x62a   :  { %v2520_v39 = vmul.f32 14.285714, %v2514_v37  ;;  %v2519_v40 = vmul.f32 14.285714, %v2512_v38 }
 0x62c   :  { %v3121_v41 = vadd.f32 -14.285714, %v2520_v39  ;;  %v3120_v42 = vadd.f32 -14.285714, %v2519_v40 }
 0x62d   :  { %v2518_v12 = vpop.xlane.xlu0 %2517  ;;  %v2516_v14 = vpop.xlane.xlu1 %2515 }
 0x62e   :  { %v2696_v43 = vmul.f32 1.442695, %v3121_v41  ;;  %v2694_v44 = vmul.f32 1.442695, %v3120_v42  ;;  %v2522_v45 = vmul.f32 14.285714, %v2518_v12 }
 0x62f   :  { %v4862_v46 = vmul.f32 14.285714, %v2516_v14 }
 0x630   :  { %3664 = vpow2.f32 %v2696_v43  ;;  %v3123_v47 = vadd.f32 -14.285714, %v2522_v45 }
 0x631   :  { %3666 = vpow2.f32 %v2694_v44  ;;  %v3122_v48 = vadd.f32 -14.285714, %v4862_v46  ;;  %v2731_v51 = vpop.xlane.xlu0 %2730  ;;  %v2728_v20 = vpop.xlane.xlu1 %2727 }
 0x632   :  { %v2700_v49 = vmul.f32 1.442695, %v3123_v47 }
 0x633   :  { %v2698_v50 = vmul.f32 1.442695, %v3122_v48 }
 0x634   :  { %3668 = vpow2.f32 %v2700_v49 }
 0x635   :  { %3670 = vpow2.f32 %v2698_v50  ;;  %v2737_v56 = vpop.xlane.xlu0 %2736  ;;  %v2734_v59 = vpop.xlane.xlu1 %2733 }
 0x63d   :  { %v3665_v21 = vpop.eup %3664 }
 0x63e   :  { %v3667_v52 = vpop.eup %3666  ;;  %v2739_v53 = vadd.f32 %v3665_v21, %v2731_v51 }
 0x63f   :  { %v2738_v54 = vadd.f32 %v3667_v52, %v2728_v20 }
 0x640   :  { %3672 = vrcp.f32 %v2739_v53 }
 0x641   :  { %v3669_v55 = vpop.eup %3668  ;;  %3674 = vrcp.f32 %v2738_v54 }
 0x642   :  { %v3671_v57 = vpop.eup %3670  ;;  %v2741_v58 = vadd.f32 %v3669_v55, %v2737_v56 }
 0x643   :  { %v2740_v60 = vadd.f32 %v3671_v57, %v2734_v59 }
 0x644   :  { %3676 = vrcp.f32 %v2741_v58 }
 0x645   :  { %3678 = vrcp.f32 %v2740_v60 }
 0x64d   :  { %v3673_v63 = vpop.eup %3672 }
 0x64e   :  { %v3675_v0 = vpop.eup %3674  ;;  %v2752_v1 = vmul.f32 %v3673_v63, %v3655_v32  ;;  %v2753_v3 = vmul.f32 %v3673_v63, %v3651_v30  ;;  %v2767_v4 = vmul.f32 %v3673_v63, %v3665_v21 }
 0x64f   :  { %v2750_v5 = vmul.f32 %v3675_v0, %v3653_v31  ;;  %v2751_v6 = vmul.f32 %v3675_v0, %v4845_v27  ;;  %v2766_v8 = vmul.f32 %v3675_v0, %v3667_v52 }
 0x650   :  { %2760 = vst [vmem:[%s4935_s19 + $0x10] sm:$0xff] %v2752_v1  ;;  %2761 = vst [vmem:[%s4935_s19 + $0x18] sm:$0xff] %v2753_v3  ;;  %v2775_v7 = vsel %vm2773_vm0, %v2767_v4, 0.0 }
 0x651   :  { %v3677_v10 = vpop.eup %3676  ;;  %v2779_v11 = vsel %vm2772_vm1, %v2520_v39, %v2775_v7  ;;  %2758 = vst [vmem:[%s4935_s19] sm:$0xff] %v2750_v5  ;;  %2759 = vst [vmem:[%s4935_s19 + $0x8] sm:$0xff] %v2751_v6  ;;  %v2774_v13 = vsel %vm2773_vm0, %v2766_v8, 0.0 }
 0x652   :  { %v3679_v16 = vpop.eup %3678  ;;  %2783 = vst [vmem:[%s4936_s20 + $0x8] sm:$0xff] %v2779_v11  ;;  %v2778_v19 = vsel %vm2772_vm1, %v2519_v40, %v2774_v13  ;;  %v2756_v22 = vmul.f32 %v3677_v10, %v4856_v36  ;;  %v2757_v23 = vmul.f32 %v3677_v10, %v4852_v35  ;;  %v2769_v61 = vmul.f32 %v3677_v10, %v3669_v55 }
 0x653   :  { %2782 = vst [vmem:[%s4936_s20] sm:$0xff] %v2778_v19  ;;  %v2754_v2 = vmul.f32 %v3679_v16, %v4854_v17  ;;  %v2755_v26 = vmul.f32 %v3679_v16, %v4849_v18  ;;  %v2768_v9 = vmul.f32 %v3679_v16, %v3671_v57 }
 0x654   :  { %2764 = vst [vmem:[%s4935_s19 + $0x30] sm:$0xff] %v2756_v22  ;;  %2765 = vst [vmem:[%s4935_s19 + $0x38] sm:$0xff] %v2757_v23  ;;  %v2777_v15 = vsel %vm2773_vm0, %v2769_v61, 0.0 }
 0x655   :  { %v2781_v27 = vsel %vm2772_vm1, %v2522_v45, %v2777_v15  ;;  %2762 = vst [vmem:[%s4935_s19 + $0x20] sm:$0xff] %v2754_v2  ;;  %2763 = vst [vmem:[%s4935_s19 + $0x28] sm:$0xff] %v2755_v26  ;;  %v2776_v28 = vsel %vm2773_vm0, %v2768_v9, 0.0 }
 0x656   :  { %2785 = vst [vmem:[%s4936_s20 + $0x18] sm:$0xff] %v2781_v27  ;;  %v2780_v29 = vsel %vm2772_vm1, %v4862_v46, %v2776_v28 }
 0x657   :  { %2784 = vst [vmem:[%s4936_s20 + $0x10] sm:$0xff] %v2780_v29 }

</bundles_post_ra>
